<compile_context>
chip_gen: v6e
topology: v6e:2x2x1
jax: 0.10.0
libtpu: 0.0.40
codegen_flags: <defaults>
</compile_context>

<pallas_src>
import functools

import jax
import jax.numpy as jnp
import numpy as np
from jax import lax
from jax.experimental import pallas as pl
from jax.experimental.pallas import tpu as pltpu


def _round_up(x, m):
    return (x + m - 1) // m * m


def _tensorcores_per_device():
    """2 for megacore / dual-TC parts (v4, v5p, v7x), else 1 (v2/v3/v5e/v6e)."""
    try:
        kind = jax.devices()[0].device_kind.lower()
    except Exception:
        return 1
    if ("v4" in kind) or ("v5p" in kind) or ("v7" in kind) or ("7x" in kind):
        return 2
    return 1


_GATE_PERM = (0, 1, 3, 2)  # PyTorch nn.LSTM gate order (i, f, g, o) -> kernel order (i, f, o, g)


def _lstm_recurrent_kernel(gx_ref, whh_ref, y_ref, h_scr, c_scr, *, hp, tc, unroll):
    """One (tc, Bb, 4*Hp) time chunk of precomputed input-gate pre-activations.

    gx_ref : (tc, Bb, 4*Hp)  x @ W_ih^T + bias, gate order (i, f, o, g), lane-padded
    whh_ref: (Hp, 4*Hp)      W_hh^T, gate-blocked + zero-padded (resident across the grid)
    y_ref  : (tc, Bb, Hp)    per-step hidden states for this chunk
    h_scr/c_scr: (Bb, Hp) f32  carried LSTM state (persists across the time-chunk grid axis)
    """
    # Re-initialize the carried (h, c) state at the first time chunk of each batch tile.
    @pl.when(pl.program_id(1) == 0)
    def _():
        h_scr[...] = jnp.zeros_like(h_scr)
        c_scr[...] = jnp.zeros_like(c_scr)

    def step(s, carry):
        h, c = carry                                    # f32, vreg-carried (no VMEM round trip)
        # Serial critical path: one small MXU push + elementwise cell update.
        gates = gx_ref[s].astype(jnp.float32) + jnp.dot(
            h.astype(whh_ref.dtype), whh_ref[...], preferred_element_type=jnp.float32)
        ifo = jax.nn.sigmoid(gates[:, : 3 * hp])        # one wide activation pass for i, f, o
        g_g = jnp.tanh(gates[:, 3 * hp:])
        i_g = ifo[:, 0 * hp:1 * hp]
        f_g = ifo[:, 1 * hp:2 * hp]
        o_g = ifo[:, 2 * hp:3 * hp]

        c_new = f_g * c + i_g * g_g                     # cell math stays f32
        h_new = o_g * jnp.tanh(c_new)
        y_ref[s] = h_new.astype(y_ref.dtype)
        return (h_new, c_new)

    h, c = lax.fori_loop(0, tc, step, (h_scr[...], c_scr[...]), unroll=unroll)
    # Persist the carry to scratch once per chunk (not once per step).
    h_scr[...] = h
    c_scr[...] = c


def lstm_pallas(x_btH, w_ih, w_hh, b_ih, b_hh, *, time_chunk=16, matmul_dtype=jnp.bfloat16):
    """Single-layer unidirectional LSTM (PyTorch nn.LSTM semantics, zero initial states).

    x_btH: (B, T, H) float32, batch-first.  w_ih/w_hh: (4H, H).  b_ih/b_hh: (4H,).
    matmul_dtype: dtype of the MXU operands (W_hh^T, gates_x, h used in the dot); the
    accumulation, cell state and elementwise math are always f32.
    Returns (B, T, H) float32 per-step hidden states.
    """
    B, T, H = x_btH.shape
    assert w_ih.shape == (4 * H, H) and w_hh.shape == (4 * H, H)
    assert b_ih.shape == (4 * H,) and b_hh.shape == (4 * H,)

    x = x_btH.astype(jnp.float32)
    mm_dtype = jnp.dtype(matmul_dtype)

    # ---- Padded, lane/sublane-aligned sizes. ------------------------------------------
    Hp = _round_up(H, 128)
    sub = 16 if mm_dtype.itemsize < 4 else 8            # bf16 sublane pack = 16, f32 = 8
    n_cores = _tensorcores_per_device()
    # Only split the batch on dual-TC parts; on single-TC chips a split is pure overhead.
    n_btiles = n_cores if (n_cores > 1 and B > sub) else 1
    Bp = _round_up(B, sub * n_btiles)
    Bb = Bp // n_btiles

    tc = max(1, min(time_chunk, T))
    Tp = _round_up(T, tc)
    n_chunks = Tp // tc

    # ---- Hoisted input projection: one big parallel matmul, bias folded in. ------------
    # W_ih / bias pre-padded into gate-blocked (i,f,o,g) layout -> einsum emits gx directly
    # as (Tp, Bp, 4*Hp); only x is padded (in B/T, cheap), never the big gx tensor.
    w_ih_t = jnp.transpose(w_ih.astype(jnp.float32)).reshape(H, 4, H)[:, _GATE_PERM, :]
    w_ih_t = jnp.pad(w_ih_t, ((0, 0), (0, 0), (0, Hp - H))).reshape(H, 4 * Hp)

    bias = (b_ih + b_hh).astype(jnp.float32).reshape(4, H)[_GATE_PERM, :]
    bias = jnp.pad(bias, ((0, 0), (0, Hp - H))).reshape(4 * Hp)

    x_p = jnp.pad(x, ((0, Bp - B), (0, Tp - T), (0, 0)))
    gx = jnp.einsum('bth,hg->tbg', x_p, w_ih_t, preferred_element_type=jnp.float32) + bias
    gx = gx.astype(mm_dtype)                            # (Tp, Bp, 4*Hp)

    # ---- Recurrent weight: transposed, gate-blocked, zero-padded -> (Hp, 4*Hp). --------
    w_hh_t = jnp.transpose(w_hh.astype(jnp.float32)).reshape(H, 4, H)[:, _GATE_PERM, :]
    w_hh_t = jnp.pad(w_hh_t, ((0, Hp - H), (0, 0), (0, Hp - H)))
    w_hh_t = w_hh_t.reshape(Hp, 4 * Hp).astype(mm_dtype)

    # ---- In-chunk unroll policy: full for small Hp, partial for large Hp. ---------------
    if Hp <= 256:
        unroll = tc
    else:
        unroll = next(u for u in (8, 4, 2, 1) if tc % u == 0)

    kernel = functools.partial(_lstm_recurrent_kernel, hp=Hp, tc=tc, unroll=unroll)

    # ---- Explicit VMEM budget from the actual (double-buffered) block sizes. ------------
    gx_blk = tc * Bb * 4 * Hp * mm_dtype.itemsize
    whh_blk = Hp * 4 * Hp * mm_dtype.itemsize
    out_blk = tc * Bb * Hp * 4
    scratch_bytes = 2 * Bb * Hp * 4
    vmem_needed = 2 * gx_blk + 2 * whh_blk + 2 * out_blk + scratch_bytes + (4 << 20)
    vmem_limit = int(min(100 << 20, max(32 << 20, vmem_needed)))
    # TODO(synk): on v7x, single-buffer the resident W_hh block (pipeline_mode=pl.Buffered(1))
    #             and/or drive the MXU weight-stationary (matmul_push_rhs) for Hp <= 256.

    flops = 2 * Tp * Bp * Hp * 4 * Hp
    transcendentals = 5 * Tp * Bp * Hp
    bytes_accessed = (gx.size + w_hh_t.size) * mm_dtype.itemsize + Tp * Bp * Hp * 4

    y_tbH = pl.pallas_call(
        kernel,
        out_shape=jax.ShapeDtypeStruct((Tp, Bp, Hp), jnp.float32),
        grid_spec=pltpu.PrefetchScalarGridSpec(
            num_scalar_prefetch=0,
            grid=(n_btiles, n_chunks),
            in_specs=[
                pl.BlockSpec((tc, Bb, 4 * Hp), lambda b, c: (c, b, 0)),   # gates_x chunk
                pl.BlockSpec((Hp, 4 * Hp), lambda b, c: (0, 0)),          # W_hh^T (resident)
            ],
            out_specs=pl.BlockSpec((tc, Bb, Hp), lambda b, c: (c, b, 0)),
            scratch_shapes=[
                pltpu.VMEM((Bb, Hp), jnp.float32),                        # h state
                pltpu.VMEM((Bb, Hp), jnp.float32),                        # c state
            ],
        ),
        compiler_params=pltpu.CompilerParams(
            # batch tiles are independent ("parallel" -> dual-TC sharding); time carries state.
            dimension_semantics=("parallel", "arbitrary"),
            vmem_limit_bytes=vmem_limit,
        ),
        cost_estimate=pl.CostEstimate(
            flops=flops, transcendentals=transcendentals, bytes_accessed=bytes_accessed),
    )(gx, w_hh_t)

    # Strip padding, return batch-first.
    return jnp.transpose(y_tbH[:T, :B, :H], (1, 0, 2))


def lstm_reference(x_btH, w_ih, w_hh, b_ih, b_hh):
    """Pure-JAX reference (PyTorch nn.LSTM semantics, zero init states)."""
    B, T, H = x_btH.shape
    b = b_ih + b_hh

    def step(carry, x_t):
        h, c = carry
        gates = x_t @ w_ih.T + h @ w_hh.T + b
        i = jax.nn.sigmoid(gates[:, 0 * H:1 * H])
        f = jax.nn.sigmoid(gates[:, 1 * H:2 * H])
        g = jnp.tanh(gates[:, 2 * H:3 * H])
        o = jax.nn.sigmoid(gates[:, 3 * H:4 * H])
        c_new = f * c + i * g
        h_new = o * jnp.tanh(c_new)
        return (h_new, c_new), h_new

    h0 = jnp.zeros((B, H), jnp.float32)
    c0 = jnp.zeros((B, H), jnp.float32)
    x_tbH = jnp.transpose(x_btH, (1, 0, 2))
    _, y_tbH = jax.lax.scan(step, (h0, c0), x_tbH)
    return jnp.transpose(y_tbH, (1, 0, 2))


if __name__ == "__main__":
    B, T, H = 2, 8, 32  # batch, seq, hidden (= input size, per LSTMOp contract)

    key = jax.random.PRNGKey(0)
    kx, k1, k2, k3, k4 = jax.random.split(key, 5)

    x = jax.random.normal(kx, (B, T, H), dtype=jnp.float32)

    # Deterministic parameter init mirroring PyTorch LSTM default U(-1/sqrt(H), 1/sqrt(H)).
    bound = 1.0 / np.sqrt(H)
    w_ih = jax.random.uniform(k1, (4 * H, H), jnp.float32, -bound, bound)
    w_hh = jax.random.uniform(k2, (4 * H, H), jnp.float32, -bound, bound)
    b_ih = jax.random.uniform(k3, (4 * H,), jnp.float32, -bound, bound)
    b_hh = jax.random.uniform(k4, (4 * H,), jnp.float32, -bound, bound)

    y_ref = jax.block_until_ready(lstm_reference(x, w_ih, w_hh, b_ih, b_hh))

    # f32 MXU operands: tight check against the f32 reference.
    y_f32 = jax.block_until_ready(
        lstm_pallas(x, w_ih, w_hh, b_ih, b_hh, matmul_dtype=jnp.float32))
    np.testing.assert_allclose(np.asarray(y_f32), np.asarray(y_ref), atol=1e-5, rtol=1e-5)

    # Default perf path: bf16 MXU operands with f32 accumulation / cell state.
    y_bf16 = jax.block_until_ready(lstm_pallas(x, w_ih, w_hh, b_ih, b_hh))
    np.testing.assert_allclose(np.asarray(y_bf16), np.asarray(y_ref), atol=5e-2, rtol=5e-2)

    print("KERNEL_OK")
</pallas_src>

<mosaic_0001>
module attributes {stable_mosaic.version = 11 : i64} {
  func.func @_lstm_recurrent_kernel(%arg0: i32, %arg1: i32, %arg2: memref<8x8x512xf32, #tpu.memory_space<vmem>>, %arg3: memref<128x512xf32, #tpu.memory_space<vmem>>, %arg4: memref<8x8x128xf32, #tpu.memory_space<vmem>>, %arg5: memref<8x128xf32, #tpu.memory_space<vmem>>, %arg6: memref<8x128xf32, #tpu.memory_space<vmem>>) attributes {dimension_semantics = [#tpu.dimension_semantics<parallel>, #tpu.dimension_semantics<arbitrary>], iteration_bounds = array<i64: 1, 1>, scalar_prefetch = 0 : i64, scratch_operands = 2 : i64, tpu.core_type = #tpu.core_type<tc>, window_params = [{transform_indices = @transform_0, window_bounds = array<i64: 8, 8, 512>}, {pipeline_mode = #tpu.pipeline_mode<synchronous>, transform_indices = @transform_1, window_bounds = array<i64: 128, 512>}, {transform_indices = @transform_2, window_bounds = array<i64: 8, 8, 128>}]} {
    %c0_i32 = arith.constant 0 : i32
    %0 = arith.cmpi eq, %arg1, %c0_i32 : i32
    %1 = arith.extui %0 : i1 to i32
    %c0_i32_0 = arith.constant 0 : i32
    %2 = arith.cmpi ne, %1, %c0_i32_0 : i32
    scf.if %2 {
      %cst_72 = arith.constant 0.000000e+00 : f32
      %215 = vector.broadcast %cst_72 : f32 to vector<8x128xf32>
      %c0_73 = arith.constant 0 : index
      %c0_74 = arith.constant 0 : index
      %216 = vector.load %arg5[%c0_73, %c0_74] : memref<8x128xf32, #tpu.memory_space<vmem>>, vector<8x128xf32>
      tpu.vector_store %arg5[%c0_73, %c0_74], %215 {strides = array<i32>} : memref<8x128xf32, #tpu.memory_space<vmem>>, vector<8x128xf32>,
      %cst_75 = arith.constant 0.000000e+00 : f32
      %217 = vector.broadcast %cst_75 : f32 to vector<8x128xf32>
      %c0_76 = arith.constant 0 : index
      %c0_77 = arith.constant 0 : index
      %218 = vector.load %arg6[%c0_76, %c0_77] : memref<8x128xf32, #tpu.memory_space<vmem>>, vector<8x128xf32>
      tpu.vector_store %arg6[%c0_76, %c0_77], %217 {strides = array<i32>} : memref<8x128xf32, #tpu.memory_space<vmem>>, vector<8x128xf32>,
    } else {
    }
    %c0 = arith.constant 0 : index
    %c0_1 = arith.constant 0 : index
    %3 = vector.load %arg5[%c0, %c0_1] : memref<8x128xf32, #tpu.memory_space<vmem>>, vector<8x128xf32>
    %c0_2 = arith.constant 0 : index
    %c0_3 = arith.constant 0 : index
    %4 = vector.load %arg6[%c0_2, %c0_3] : memref<8x128xf32, #tpu.memory_space<vmem>>, vector<8x128xf32>
    %c0_i32_4 = arith.constant 0 : i32
    %5 = arith.index_cast %c0_i32_4 : i32 to index
    %c0_5 = arith.constant 0 : index
    %c0_6 = arith.constant 0 : index
    %6 = vector.load %arg2[%5, %c0_5, %c0_6] : memref<8x8x512xf32, #tpu.memory_space<vmem>>, vector<1x8x512xf32>
    %7 = vector.shape_cast %6 : vector<1x8x512xf32> to vector<8x512xf32>
    %c0_7 = arith.constant 0 : index
    %c0_8 = arith.constant 0 : index
    %8 = vector.load %arg3[%c0_7, %c0_8] : memref<128x512xf32, #tpu.memory_space<vmem>>, vector<128x512xf32>
    %cst = arith.constant dense<0.000000e+00> : vector<8x512xf32>
    %9 = tpu.matmul %3, %8, %cst {dimension_numbers = #tpu.dot_dimension_numbers<[1], [0], [0], [1], [0, 0, 1, 1], [], []>} : vector<8x128xf32>, vector<128x512xf32>, vector<8x512xf32> -> vector<8x512xf32>
    %10 = arith.addf %7, %9 : vector<8x512xf32>
    %11 = vector.extract_strided_slice %10 {offsets = [0, 0], sizes = [8, 384], strides = [1, 1]} : vector<8x512xf32> to vector<8x384xf32>
    %12 = arith.negf %11 : vector<8x384xf32>
    %13 = math.exp %12 : vector<8x384xf32>
    %cst_9 = arith.constant 1.000000e+00 : f32
    %14 = vector.broadcast %cst_9 : f32 to vector<8x384xf32>
    %15 = arith.addf %14, %13 : vector<8x384xf32>
    %16 = arith.divf %14, %15 : vector<8x384xf32>
    %17 = vector.extract_strided_slice %10 {offsets = [0, 384], sizes = [8, 128], strides = [1, 1]} : vector<8x512xf32> to vector<8x128xf32>
    %18 = math.tanh %17 : vector<8x128xf32>
    %19 = vector.extract_strided_slice %16 {offsets = [0, 0], sizes = [8, 128], strides = [1, 1]} : vector<8x384xf32> to vector<8x128xf32>
    %20 = vector.extract_strided_slice %16 {offsets = [0, 128], sizes = [8, 128], strides = [1, 1]} : vector<8x384xf32> to vector<8x128xf32>
    %21 = vector.extract_strided_slice %16 {offsets = [0, 256], sizes = [8, 128], strides = [1, 1]} : vector<8x384xf32> to vector<8x128xf32>
    %22 = arith.mulf %20, %4 : vector<8x128xf32>
    %23 = arith.mulf %19, %18 : vector<8x128xf32>
    %24 = arith.addf %22, %23 : vector<8x128xf32>
    %25 = math.tanh %24 : vector<8x128xf32>
    %26 = arith.mulf %21, %25 : vector<8x128xf32>
    %27 = arith.index_cast %c0_i32_4 : i32 to index
    %c0_10 = arith.constant 0 : index
    %c0_11 = arith.constant 0 : index
    %28 = vector.load %arg4[%27, %c0_10, %c0_11] : memref<8x8x128xf32, #tpu.memory_space<vmem>>, vector<1x8x128xf32>
    %29 = vector.shape_cast %28 : vector<1x8x128xf32> to vector<8x128xf32>
    %30 = vector.shape_cast %26 : vector<8x128xf32> to vector<1x8x128xf32>
    tpu.vector_store %arg4[%27, %c0_10, %c0_11], %30 {strides = array<i32>} : memref<8x8x128xf32, #tpu.memory_space<vmem>>, vector<1x8x128xf32>,
    %c1_i32 = arith.constant 1 : i32
    %31 = arith.index_cast %c1_i32 : i32 to index
    %c0_12 = arith.constant 0 : index
    %c0_13 = arith.constant 0 : index
    %32 = vector.load %arg2[%31, %c0_12, %c0_13] : memref<8x8x512xf32, #tpu.memory_space<vmem>>, vector<1x8x512xf32>
    %33 = vector.shape_cast %32 : vector<1x8x512xf32> to vector<8x512xf32>
    %c0_14 = arith.constant 0 : index
    %c0_15 = arith.constant 0 : index
    %34 = vector.load %arg3[%c0_14, %c0_15] : memref<128x512xf32, #tpu.memory_space<vmem>>, vector<128x512xf32>
    %cst_16 = arith.constant dense<0.000000e+00> : vector<8x512xf32>
    %35 = tpu.matmul %26, %34, %cst_16 {dimension_numbers = #tpu.dot_dimension_numbers<[1], [0], [0], [1], [0, 0, 1, 1], [], []>} : vector<8x128xf32>, vector<128x512xf32>, vector<8x512xf32> -> vector<8x512xf32>
    %36 = arith.addf %33, %35 : vector<8x512xf32>
    %37 = vector.extract_strided_slice %36 {offsets = [0, 0], sizes = [8, 384], strides = [1, 1]} : vector<8x512xf32> to vector<8x384xf32>
    %38 = arith.negf %37 : vector<8x384xf32>
    %39 = math.exp %38 : vector<8x384xf32>
    %cst_17 = arith.constant 1.000000e+00 : f32
    %40 = vector.broadcast %cst_17 : f32 to vector<8x384xf32>
    %41 = arith.addf %40, %39 : vector<8x384xf32>
    %42 = arith.divf %40, %41 : vector<8x384xf32>
    %43 = vector.extract_strided_slice %36 {offsets = [0, 384], sizes = [8, 128], strides = [1, 1]} : vector<8x512xf32> to vector<8x128xf32>
    %44 = math.tanh %43 : vector<8x128xf32>
    %45 = vector.extract_strided_slice %42 {offsets = [0, 0], sizes = [8, 128], strides = [1, 1]} : vector<8x384xf32> to vector<8x128xf32>
    %46 = vector.extract_strided_slice %42 {offsets = [0, 128], sizes = [8, 128], strides = [1, 1]} : vector<8x384xf32> to vector<8x128xf32>
    %47 = vector.extract_strided_slice %42 {offsets = [0, 256], sizes = [8, 128], strides = [1, 1]} : vector<8x384xf32> to vector<8x128xf32>
    %48 = arith.mulf %46, %24 : vector<8x128xf32>
    %49 = arith.mulf %45, %44 : vector<8x128xf32>
    %50 = arith.addf %48, %49 : vector<8x128xf32>
    %51 = math.tanh %50 : vector<8x128xf32>
    %52 = arith.mulf %47, %51 : vector<8x128xf32>
    %53 = arith.index_cast %c1_i32 : i32 to index
    %c0_18 = arith.constant 0 : index
    %c0_19 = arith.constant 0 : index
    %54 = vector.load %arg4[%53, %c0_18, %c0_19] : memref<8x8x128xf32, #tpu.memory_space<vmem>>, vector<1x8x128xf32>
    %55 = vector.shape_cast %54 : vector<1x8x128xf32> to vector<8x128xf32>
    %56 = vector.shape_cast %52 : vector<8x128xf32> to vector<1x8x128xf32>
    tpu.vector_store %arg4[%53, %c0_18, %c0_19], %56 {strides = array<i32>} : memref<8x8x128xf32, #tpu.memory_space<vmem>>, vector<1x8x128xf32>,
    %c2_i32 = arith.constant 2 : i32
    %57 = arith.index_cast %c2_i32 : i32 to index
    %c0_20 = arith.constant 0 : index
    %c0_21 = arith.constant 0 : index
    %58 = vector.load %arg2[%57, %c0_20, %c0_21] : memref<8x8x512xf32, #tpu.memory_space<vmem>>, vector<1x8x512xf32>
    %59 = vector.shape_cast %58 : vector<1x8x512xf32> to vector<8x512xf32>
    %c0_22 = arith.constant 0 : index
    %c0_23 = arith.constant 0 : index
    %60 = vector.load %arg3[%c0_22, %c0_23] : memref<128x512xf32, #tpu.memory_space<vmem>>, vector<128x512xf32>
    %cst_24 = arith.constant dense<0.000000e+00> : vector<8x512xf32>
    %61 = tpu.matmul %52, %60, %cst_24 {dimension_numbers = #tpu.dot_dimension_numbers<[1], [0], [0], [1], [0, 0, 1, 1], [], []>} : vector<8x128xf32>, vector<128x512xf32>, vector<8x512xf32> -> vector<8x512xf32>
    %62 = arith.addf %59, %61 : vector<8x512xf32>
    %63 = vector.extract_strided_slice %62 {offsets = [0, 0], sizes = [8, 384], strides = [1, 1]} : vector<8x512xf32> to vector<8x384xf32>
    %64 = arith.negf %63 : vector<8x384xf32>
    %65 = math.exp %64 : vector<8x384xf32>
    %cst_25 = arith.constant 1.000000e+00 : f32
    %66 = vector.broadcast %cst_25 : f32 to vector<8x384xf32>
    %67 = arith.addf %66, %65 : vector<8x384xf32>
    %68 = arith.divf %66, %67 : vector<8x384xf32>
    %69 = vector.extract_strided_slice %62 {offsets = [0, 384], sizes = [8, 128], strides = [1, 1]} : vector<8x512xf32> to vector<8x128xf32>
    %70 = math.tanh %69 : vector<8x128xf32>
    %71 = vector.extract_strided_slice %68 {offsets = [0, 0], sizes = [8, 128], strides = [1, 1]} : vector<8x384xf32> to vector<8x128xf32>
    %72 = vector.extract_strided_slice %68 {offsets = [0, 128], sizes = [8, 128], strides = [1, 1]} : vector<8x384xf32> to vector<8x128xf32>
    %73 = vector.extract_strided_slice %68 {offsets = [0, 256], sizes = [8, 128], strides = [1, 1]} : vector<8x384xf32> to vector<8x128xf32>
    %74 = arith.mulf %72, %50 : vector<8x128xf32>
    %75 = arith.mulf %71, %70 : vector<8x128xf32>
    %76 = arith.addf %74, %75 : vector<8x128xf32>
    %77 = math.tanh %76 : vector<8x128xf32>
    %78 = arith.mulf %73, %77 : vector<8x128xf32>
    %79 = arith.index_cast %c2_i32 : i32 to index
    %c0_26 = arith.constant 0 : index
    %c0_27 = arith.constant 0 : index
    %80 = vector.load %arg4[%79, %c0_26, %c0_27] : memref<8x8x128xf32, #tpu.memory_space<vmem>>, vector<1x8x128xf32>
    %81 = vector.shape_cast %80 : vector<1x8x128xf32> to vector<8x128xf32>
    %82 = vector.shape_cast %78 : vector<8x128xf32> to vector<1x8x128xf32>
    tpu.vector_store %arg4[%79, %c0_26, %c0_27], %82 {strides = array<i32>} : memref<8x8x128xf32, #tpu.memory_space<vmem>>, vector<1x8x128xf32>,
    %c3_i32 = arith.constant 3 : i32
    %83 = arith.index_cast %c3_i32 : i32 to index
    %c0_28 = arith.constant 0 : index
    %c0_29 = arith.constant 0 : index
    %84 = vector.load %arg2[%83, %c0_28, %c0_29] : memref<8x8x512xf32, #tpu.memory_space<vmem>>, vector<1x8x512xf32>
    %85 = vector.shape_cast %84 : vector<1x8x512xf32> to vector<8x512xf32>
    %c0_30 = arith.constant 0 : index
    %c0_31 = arith.constant 0 : index
    %86 = vector.load %arg3[%c0_30, %c0_31] : memref<128x512xf32, #tpu.memory_space<vmem>>, vector<128x512xf32>
    %cst_32 = arith.constant dense<0.000000e+00> : vector<8x512xf32>
    %87 = tpu.matmul %78, %86, %cst_32 {dimension_numbers = #tpu.dot_dimension_numbers<[1], [0], [0], [1], [0, 0, 1, 1], [], []>} : vector<8x128xf32>, vector<128x512xf32>, vector<8x512xf32> -> vector<8x512xf32>
    %88 = arith.addf %85, %87 : vector<8x512xf32>
    %89 = vector.extract_strided_slice %88 {offsets = [0, 0], sizes = [8, 384], strides = [1, 1]} : vector<8x512xf32> to vector<8x384xf32>
    %90 = arith.negf %89 : vector<8x384xf32>
    %91 = math.exp %90 : vector<8x384xf32>
    %cst_33 = arith.constant 1.000000e+00 : f32
    %92 = vector.broadcast %cst_33 : f32 to vector<8x384xf32>
    %93 = arith.addf %92, %91 : vector<8x384xf32>
    %94 = arith.divf %92, %93 : vector<8x384xf32>
    %95 = vector.extract_strided_slice %88 {offsets = [0, 384], sizes = [8, 128], strides = [1, 1]} : vector<8x512xf32> to vector<8x128xf32>
    %96 = math.tanh %95 : vector<8x128xf32>
    %97 = vector.extract_strided_slice %94 {offsets = [0, 0], sizes = [8, 128], strides = [1, 1]} : vector<8x384xf32> to vector<8x128xf32>
    %98 = vector.extract_strided_slice %94 {offsets = [0, 128], sizes = [8, 128], strides = [1, 1]} : vector<8x384xf32> to vector<8x128xf32>
    %99 = vector.extract_strided_slice %94 {offsets = [0, 256], sizes = [8, 128], strides = [1, 1]} : vector<8x384xf32> to vector<8x128xf32>
    %100 = arith.mulf %98, %76 : vector<8x128xf32>
    %101 = arith.mulf %97, %96 : vector<8x128xf32>
    %102 = arith.addf %100, %101 : vector<8x128xf32>
    %103 = math.tanh %102 : vector<8x128xf32>
    %104 = arith.mulf %99, %103 : vector<8x128xf32>
    %105 = arith.index_cast %c3_i32 : i32 to index
    %c0_34 = arith.constant 0 : index
    %c0_35 = arith.constant 0 : index
    %106 = vector.load %arg4[%105, %c0_34, %c0_35] : memref<8x8x128xf32, #tpu.memory_space<vmem>>, vector<1x8x128xf32>
    %107 = vector.shape_cast %106 : vector<1x8x128xf32> to vector<8x128xf32>
    %108 = vector.shape_cast %104 : vector<8x128xf32> to vector<1x8x128xf32>
    tpu.vector_store %arg4[%105, %c0_34, %c0_35], %108 {strides = array<i32>} : memref<8x8x128xf32, #tpu.memory_space<vmem>>, vector<1x8x128xf32>,
    %c4_i32 = arith.constant 4 : i32
    %109 = arith.index_cast %c4_i32 : i32 to index
    %c0_36 = arith.constant 0 : index
    %c0_37 = arith.constant 0 : index
    %110 = vector.load %arg2[%109, %c0_36, %c0_37] : memref<8x8x512xf32, #tpu.memory_space<vmem>>, vector<1x8x512xf32>
    %111 = vector.shape_cast %110 : vector<1x8x512xf32> to vector<8x512xf32>
    %c0_38 = arith.constant 0 : index
    %c0_39 = arith.constant 0 : index
    %112 = vector.load %arg3[%c0_38, %c0_39] : memref<128x512xf32, #tpu.memory_space<vmem>>, vector<128x512xf32>
    %cst_40 = arith.constant dense<0.000000e+00> : vector<8x512xf32>
    %113 = tpu.matmul %104, %112, %cst_40 {dimension_numbers = #tpu.dot_dimension_numbers<[1], [0], [0], [1], [0, 0, 1, 1], [], []>} : vector<8x128xf32>, vector<128x512xf32>, vector<8x512xf32> -> vector<8x512xf32>
    %114 = arith.addf %111, %113 : vector<8x512xf32>
    %115 = vector.extract_strided_slice %114 {offsets = [0, 0], sizes = [8, 384], strides = [1, 1]} : vector<8x512xf32> to vector<8x384xf32>
    %116 = arith.negf %115 : vector<8x384xf32>
    %117 = math.exp %116 : vector<8x384xf32>
    %cst_41 = arith.constant 1.000000e+00 : f32
    %118 = vector.broadcast %cst_41 : f32 to vector<8x384xf32>
    %119 = arith.addf %118, %117 : vector<8x384xf32>
    %120 = arith.divf %118, %119 : vector<8x384xf32>
    %121 = vector.extract_strided_slice %114 {offsets = [0, 384], sizes = [8, 128], strides = [1, 1]} : vector<8x512xf32> to vector<8x128xf32>
    %122 = math.tanh %121 : vector<8x128xf32>
    %123 = vector.extract_strided_slice %120 {offsets = [0, 0], sizes = [8, 128], strides = [1, 1]} : vector<8x384xf32> to vector<8x128xf32>
    %124 = vector.extract_strided_slice %120 {offsets = [0, 128], sizes = [8, 128], strides = [1, 1]} : vector<8x384xf32> to vector<8x128xf32>
    %125 = vector.extract_strided_slice %120 {offsets = [0, 256], sizes = [8, 128], strides = [1, 1]} : vector<8x384xf32> to vector<8x128xf32>
    %126 = arith.mulf %124, %102 : vector<8x128xf32>
    %127 = arith.mulf %123, %122 : vector<8x128xf32>
    %128 = arith.addf %126, %127 : vector<8x128xf32>
    %129 = math.tanh %128 : vector<8x128xf32>
    %130 = arith.mulf %125, %129 : vector<8x128xf32>
    %131 = arith.index_cast %c4_i32 : i32 to index
    %c0_42 = arith.constant 0 : index
    %c0_43 = arith.constant 0 : index
    %132 = vector.load %arg4[%131, %c0_42, %c0_43] : memref<8x8x128xf32, #tpu.memory_space<vmem>>, vector<1x8x128xf32>
    %133 = vector.shape_cast %132 : vector<1x8x128xf32> to vector<8x128xf32>
    %134 = vector.shape_cast %130 : vector<8x128xf32> to vector<1x8x128xf32>
    tpu.vector_store %arg4[%131, %c0_42, %c0_43], %134 {strides = array<i32>} : memref<8x8x128xf32, #tpu.memory_space<vmem>>, vector<1x8x128xf32>,
    %c5_i32 = arith.constant 5 : i32
    %135 = arith.index_cast %c5_i32 : i32 to index
    %c0_44 = arith.constant 0 : index
    %c0_45 = arith.constant 0 : index
    %136 = vector.load %arg2[%135, %c0_44, %c0_45] : memref<8x8x512xf32, #tpu.memory_space<vmem>>, vector<1x8x512xf32>
    %137 = vector.shape_cast %136 : vector<1x8x512xf32> to vector<8x512xf32>
    %c0_46 = arith.constant 0 : index
    %c0_47 = arith.constant 0 : index
    %138 = vector.load %arg3[%c0_46, %c0_47] : memref<128x512xf32, #tpu.memory_space<vmem>>, vector<128x512xf32>
    %cst_48 = arith.constant dense<0.000000e+00> : vector<8x512xf32>
    %139 = tpu.matmul %130, %138, %cst_48 {dimension_numbers = #tpu.dot_dimension_numbers<[1], [0], [0], [1], [0, 0, 1, 1], [], []>} : vector<8x128xf32>, vector<128x512xf32>, vector<8x512xf32> -> vector<8x512xf32>
    %140 = arith.addf %137, %139 : vector<8x512xf32>
    %141 = vector.extract_strided_slice %140 {offsets = [0, 0], sizes = [8, 384], strides = [1, 1]} : vector<8x512xf32> to vector<8x384xf32>
    %142 = arith.negf %141 : vector<8x384xf32>
    %143 = math.exp %142 : vector<8x384xf32>
    %cst_49 = arith.constant 1.000000e+00 : f32
    %144 = vector.broadcast %cst_49 : f32 to vector<8x384xf32>
    %145 = arith.addf %144, %143 : vector<8x384xf32>
    %146 = arith.divf %144, %145 : vector<8x384xf32>
    %147 = vector.extract_strided_slice %140 {offsets = [0, 384], sizes = [8, 128], strides = [1, 1]} : vector<8x512xf32> to vector<8x128xf32>
    %148 = math.tanh %147 : vector<8x128xf32>
    %149 = vector.extract_strided_slice %146 {offsets = [0, 0], sizes = [8, 128], strides = [1, 1]} : vector<8x384xf32> to vector<8x128xf32>
    %150 = vector.extract_strided_slice %146 {offsets = [0, 128], sizes = [8, 128], strides = [1, 1]} : vector<8x384xf32> to vector<8x128xf32>
    %151 = vector.extract_strided_slice %146 {offsets = [0, 256], sizes = [8, 128], strides = [1, 1]} : vector<8x384xf32> to vector<8x128xf32>
    %152 = arith.mulf %150, %128 : vector<8x128xf32>
    %153 = arith.mulf %149, %148 : vector<8x128xf32>
    %154 = arith.addf %152, %153 : vector<8x128xf32>
    %155 = math.tanh %154 : vector<8x128xf32>
    %156 = arith.mulf %151, %155 : vector<8x128xf32>
    %157 = arith.index_cast %c5_i32 : i32 to index
    %c0_50 = arith.constant 0 : index
    %c0_51 = arith.constant 0 : index
    %158 = vector.load %arg4[%157, %c0_50, %c0_51] : memref<8x8x128xf32, #tpu.memory_space<vmem>>, vector<1x8x128xf32>
    %159 = vector.shape_cast %158 : vector<1x8x128xf32> to vector<8x128xf32>
    %160 = vector.shape_cast %156 : vector<8x128xf32> to vector<1x8x128xf32>
    tpu.vector_store %arg4[%157, %c0_50, %c0_51], %160 {strides = array<i32>} : memref<8x8x128xf32, #tpu.memory_space<vmem>>, vector<1x8x128xf32>,
    %c6_i32 = arith.constant 6 : i32
    %161 = arith.index_cast %c6_i32 : i32 to index
    %c0_52 = arith.constant 0 : index
    %c0_53 = arith.constant 0 : index
    %162 = vector.load %arg2[%161, %c0_52, %c0_53] : memref<8x8x512xf32, #tpu.memory_space<vmem>>, vector<1x8x512xf32>
    %163 = vector.shape_cast %162 : vector<1x8x512xf32> to vector<8x512xf32>
    %c0_54 = arith.constant 0 : index
    %c0_55 = arith.constant 0 : index
    %164 = vector.load %arg3[%c0_54, %c0_55] : memref<128x512xf32, #tpu.memory_space<vmem>>, vector<128x512xf32>
    %cst_56 = arith.constant dense<0.000000e+00> : vector<8x512xf32>
    %165 = tpu.matmul %156, %164, %cst_56 {dimension_numbers = #tpu.dot_dimension_numbers<[1], [0], [0], [1], [0, 0, 1, 1], [], []>} : vector<8x128xf32>, vector<128x512xf32>, vector<8x512xf32> -> vector<8x512xf32>
    %166 = arith.addf %163, %165 : vector<8x512xf32>
    %167 = vector.extract_strided_slice %166 {offsets = [0, 0], sizes = [8, 384], strides = [1, 1]} : vector<8x512xf32> to vector<8x384xf32>
    %168 = arith.negf %167 : vector<8x384xf32>
    %169 = math.exp %168 : vector<8x384xf32>
    %cst_57 = arith.constant 1.000000e+00 : f32
    %170 = vector.broadcast %cst_57 : f32 to vector<8x384xf32>
    %171 = arith.addf %170, %169 : vector<8x384xf32>
    %172 = arith.divf %170, %171 : vector<8x384xf32>
    %173 = vector.extract_strided_slice %166 {offsets = [0, 384], sizes = [8, 128], strides = [1, 1]} : vector<8x512xf32> to vector<8x128xf32>
    %174 = math.tanh %173 : vector<8x128xf32>
    %175 = vector.extract_strided_slice %172 {offsets = [0, 0], sizes = [8, 128], strides = [1, 1]} : vector<8x384xf32> to vector<8x128xf32>
    %176 = vector.extract_strided_slice %172 {offsets = [0, 128], sizes = [8, 128], strides = [1, 1]} : vector<8x384xf32> to vector<8x128xf32>
    %177 = vector.extract_strided_slice %172 {offsets = [0, 256], sizes = [8, 128], strides = [1, 1]} : vector<8x384xf32> to vector<8x128xf32>
    %178 = arith.mulf %176, %154 : vector<8x128xf32>
    %179 = arith.mulf %175, %174 : vector<8x128xf32>
    %180 = arith.addf %178, %179 : vector<8x128xf32>
    %181 = math.tanh %180 : vector<8x128xf32>
    %182 = arith.mulf %177, %181 : vector<8x128xf32>
    %183 = arith.index_cast %c6_i32 : i32 to index
    %c0_58 = arith.constant 0 : index
    %c0_59 = arith.constant 0 : index
    %184 = vector.load %arg4[%183, %c0_58, %c0_59] : memref<8x8x128xf32, #tpu.memory_space<vmem>>, vector<1x8x128xf32>
    %185 = vector.shape_cast %184 : vector<1x8x128xf32> to vector<8x128xf32>
    %186 = vector.shape_cast %182 : vector<8x128xf32> to vector<1x8x128xf32>
    tpu.vector_store %arg4[%183, %c0_58, %c0_59], %186 {strides = array<i32>} : memref<8x8x128xf32, #tpu.memory_space<vmem>>, vector<1x8x128xf32>,
    %c7_i32 = arith.constant 7 : i32
    %187 = arith.index_cast %c7_i32 : i32 to index
    %c0_60 = arith.constant 0 : index
    %c0_61 = arith.constant 0 : index
    %188 = vector.load %arg2[%187, %c0_60, %c0_61] : memref<8x8x512xf32, #tpu.memory_space<vmem>>, vector<1x8x512xf32>
    %189 = vector.shape_cast %188 : vector<1x8x512xf32> to vector<8x512xf32>
    %c0_62 = arith.constant 0 : index
    %c0_63 = arith.constant 0 : index
    %190 = vector.load %arg3[%c0_62, %c0_63] : memref<128x512xf32, #tpu.memory_space<vmem>>, vector<128x512xf32>
    %cst_64 = arith.constant dense<0.000000e+00> : vector<8x512xf32>
    %191 = tpu.matmul %182, %190, %cst_64 {dimension_numbers = #tpu.dot_dimension_numbers<[1], [0], [0], [1], [0, 0, 1, 1], [], []>} : vector<8x128xf32>, vector<128x512xf32>, vector<8x512xf32> -> vector<8x512xf32>
    %192 = arith.addf %189, %191 : vector<8x512xf32>
    %193 = vector.extract_strided_slice %192 {offsets = [0, 0], sizes = [8, 384], strides = [1, 1]} : vector<8x512xf32> to vector<8x384xf32>
    %194 = arith.negf %193 : vector<8x384xf32>
    %195 = math.exp %194 : vector<8x384xf32>
    %cst_65 = arith.constant 1.000000e+00 : f32
    %196 = vector.broadcast %cst_65 : f32 to vector<8x384xf32>
    %197 = arith.addf %196, %195 : vector<8x384xf32>
    %198 = arith.divf %196, %197 : vector<8x384xf32>
    %199 = vector.extract_strided_slice %192 {offsets = [0, 384], sizes = [8, 128], strides = [1, 1]} : vector<8x512xf32> to vector<8x128xf32>
    %200 = math.tanh %199 : vector<8x128xf32>
    %201 = vector.extract_strided_slice %198 {offsets = [0, 0], sizes = [8, 128], strides = [1, 1]} : vector<8x384xf32> to vector<8x128xf32>
    %202 = vector.extract_strided_slice %198 {offsets = [0, 128], sizes = [8, 128], strides = [1, 1]} : vector<8x384xf32> to vector<8x128xf32>
    %203 = vector.extract_strided_slice %198 {offsets = [0, 256], sizes = [8, 128], strides = [1, 1]} : vector<8x384xf32> to vector<8x128xf32>
    %204 = arith.mulf %202, %180 : vector<8x128xf32>
    %205 = arith.mulf %201, %200 : vector<8x128xf32>
    %206 = arith.addf %204, %205 : vector<8x128xf32>
    %207 = math.tanh %206 : vector<8x128xf32>
    %208 = arith.mulf %203, %207 : vector<8x128xf32>
    %209 = arith.index_cast %c7_i32 : i32 to index
    %c0_66 = arith.constant 0 : index
    %c0_67 = arith.constant 0 : index
    %210 = vector.load %arg4[%209, %c0_66, %c0_67] : memref<8x8x128xf32, #tpu.memory_space<vmem>>, vector<1x8x128xf32>
    %211 = vector.shape_cast %210 : vector<1x8x128xf32> to vector<8x128xf32>
    %212 = vector.shape_cast %208 : vector<8x128xf32> to vector<1x8x128xf32>
    tpu.vector_store %arg4[%209, %c0_66, %c0_67], %212 {strides = array<i32>} : memref<8x8x128xf32, #tpu.memory_space<vmem>>, vector<1x8x128xf32>,
    %c8_i32 = arith.constant 8 : i32
    %c0_68 = arith.constant 0 : index
    %c0_69 = arith.constant 0 : index
    %213 = vector.load %arg5[%c0_68, %c0_69] : memref<8x128xf32, #tpu.memory_space<vmem>>, vector<8x128xf32>
    tpu.vector_store %arg5[%c0_68, %c0_69], %208 {strides = array<i32>} : memref<8x128xf32, #tpu.memory_space<vmem>>, vector<8x128xf32>,
    %c0_70 = arith.constant 0 : index
    %c0_71 = arith.constant 0 : index
    %214 = vector.load %arg6[%c0_70, %c0_71] : memref<8x128xf32, #tpu.memory_space<vmem>>, vector<8x128xf32>
    tpu.vector_store %arg6[%c0_70, %c0_71], %206 {strides = array<i32>} : memref<8x128xf32, #tpu.memory_space<vmem>>, vector<8x128xf32>,
    return
  }
  func.func @transform_0(%arg0: i32, %arg1: i32) -> (i32, i32, i32) {
    %c0_i32 = arith.constant 0 : i32
    %c0_i32_0 = arith.constant 0 : i32
    return %arg1, %arg0, %c0_i32 : i32, i32, i32
  }
  func.func @transform_1(%arg0: i32, %arg1: i32) -> (i32, i32) {
    %c0_i32 = arith.constant 0 : i32
    %c0_i32_0 = arith.constant 0 : i32
    %c0_i32_1 = arith.constant 0 : i32
    return %c0_i32, %c0_i32_0 : i32, i32
  }
  func.func @transform_2(%arg0: i32, %arg1: i32) -> (i32, i32, i32) {
    %c0_i32 = arith.constant 0 : i32
    %c0_i32_0 = arith.constant 0 : i32
    return %arg1, %arg0, %c0_i32 : i32, i32, i32
  }
}

</mosaic_0001>

<bundles_post_ra>
// kernel: tpu_custom_call.1
= control target key start
LH: loop header
LB: loop body
LE: loop exit
PB: predicated region body
PF: predicated region fallthrough
CT: control target
= control target key end

     0   :  { %7 = vsyncpa [#allocation5], 0  ;;  %s3043_s0 = inlined_call_operand.hbm [shape: f32[8,8,512], index: 0, kind: input, shape index: {}]   ;;  %s3044_s1 = inlined_call_operand.hbm [shape: f32[128,512], index: 1, kind: input, shape index: {}]   ;;  %s3045_s2 = inlined_call_operand.hbm [shape: f32[8,8,128], index: 2, kind: output, shape index: {}]  }
   0x1   :  { %8 = vsyncpa [#allocation8], 0 }
   0x2   :  { %9 = vsyncpa [#allocation6], 0  ;;  %s2220_s9 = smov [#allocation4]  }
   0x3   :  { %s15_s10 = sshll.u32 %s2220_s9, 4  ;;  %s16_s10 = int_to_ptr.vmem [resolvable:$true] %s15_s10 }
   0x4   :  { %s2162_s11 = scalar_lea.vmem %s16_s10, 4096  ;;  %p2167_p1 = scmp.lt.s32.totalorder %s16_s10, %s16_s10 }
   0x5   :  { %p2163_p0 = scmp.ne.s32.totalorder %s16_s10, %s2162_s11  ;;  %p2168_p2 = scmp.lt.s32.totalorder %s2162_s11, %s2162_s11 }
   0x7   :  { %p2169_p3 = por %p2168_p2, %p2167_p1 }
   0x9   :  { %p2170_p4 = pnand %p2169_p3, %p2163_p0 }
   0xb   :  { %2173 = shalt.err (!%p2170_p4)
}
   0xc   :  { %s2221_s12 = smov 512   ;;  %s2222_s13 = smov 32  }
   0xd   :  { %21 = dma.hbm_to_vmem [thread:$0]  %s3043_s0, 4096, %s16_s10, [#allocation5], %s2221_s12, %s2221_s12, %s2222_s13  }
   0xe   :  { %s2223_s16 = smov [#allocation7]  }
   0xf   :  { %s27_s17 = sshll.u32 %s2223_s16, 4  ;;  %s28_s17 = int_to_ptr.vmem [resolvable:$true] %s27_s17 }
  0x10   :  { %s2182_s18 = scalar_lea.vmem %s28_s17, 8192  ;;  %p2187_p6 = scmp.lt.s32.totalorder %s28_s17, %s28_s17 }
  0x11   :  { %p2183_p5 = scmp.ne.s32.totalorder %s28_s17, %s2182_s18  ;;  %p2188_p7 = scmp.lt.s32.totalorder %s2182_s18, %s2182_s18 }
  0x13   :  { %p2189_p8 = por %p2188_p7, %p2187_p6 }
  0x15   :  { %p2190_p9 = pnand %p2189_p8, %p2183_p5 }
  0x17   :  { %2193 = shalt.err (!%p2190_p9)
}
  0x18   :  { %33 = dma.hbm_to_vmem [thread:$0]  %s3044_s1, 8192, %s28_s17, [#allocation8], %s2221_s12, %s2221_s12, %s2222_s13  }
  0x19   :  { %2214 = dma.done.wait [#allocation5], 4096  }
  0x1a   :  { %2215 = vsyncadd [#allocation5], 4294963200 }
  0x1b   :  { %2216 = dma.done.wait [#allocation8], 8192  }
  0x1c   :  { %2217 = vsyncadd [#allocation8], 4294959104  ;;  %v3048_v0 = vmov 0.0   ;;  %v2251_v1 = vld [vmem:[#allocation7 + $0x1e8] sm:$0xff]  ;;  %v2253_v2 = vld [vmem:[#allocation7 + $0x1e0] sm:$0xff]  ;;  %s2225_s0 = smov [#allocation9]  }
  0x1d   :  { %180 = vmatprep.mubr.f32.mxu0 %v3048_v0  ;;  %251 = vmatprep.mubr.f32.mxu1 %v3048_v0  ;;  %3118 = vst [vmem:[#allocation13_spill] sm:$0xff] %v2251_v1  ;;  %v2255_v3 = vld [vmem:[#allocation7 + $0x1c8] sm:$0xff]  ;;  %v2258_v4 = vld [vmem:[#allocation7 + $0x1c0] sm:$0xff]  ;;  %v2272_v9 = vld [vmem:[#allocation7 + $0x1f8] sm:$0xff]  ;;  %s1981_s1 = sshll.u32 %s2225_s0, 4  ;;  %s1982_s1 = int_to_ptr.vmem [resolvable:$true] %s1981_s1 }
  0x1e   :  { %116 = vmatprep.subr.mxu0 %v2251_v1  ;;  %v2261_v5 = vld [vmem:[#allocation7 + $0x1a8] sm:$0xff]  ;;  %v2264_v6 = vld [vmem:[#allocation7 + $0x1a0] sm:$0xff]  ;;  %3119 = vst [vmem:[#allocation14_spill] sm:$0xff] %v2272_v9  ;;  %187 = vmatprep.subr.mxu1 %v2272_v9  ;;  %v2278_v11 = vld [vmem:[#allocation7 + $0x1f0] sm:$0xff]  ;;  %s2194_s21 = scalar_lea.vmem %s1982_s1, 1024  ;;  %p2199_p11 = scmp.lt.s32.totalorder %s1982_s1, %s1982_s1 }
  0x1f   :  { %117 = vmatpush1.msra.mxu0 %v2253_v2  ;;  %v2267_v7 = vld [vmem:[#allocation7 + $0x188] sm:$0xff]  ;;  %v2270_v8 = vld [vmem:[#allocation7 + $0x180] sm:$0xff]  ;;  %188 = vmatpush1.msra.mxu1 %v2278_v11  ;;  %v2284_v13 = vld [vmem:[#allocation7 + $0x1d8] sm:$0xff]  ;;  %p2195_p10 = scmp.ne.s32.totalorder %s1982_s1, %s2194_s21  ;;  %p2200_p12 = scmp.lt.s32.totalorder %s2194_s21, %s2194_s21 }
  0x20   :  { %118 = vmatprep.subr.mxu0 %v2255_v3  ;;  %v2275_v10 = vld [vmem:[#allocation7 + $0x168] sm:$0xff]  ;;  %v2281_v12 = vld [vmem:[#allocation7 + $0x160] sm:$0xff]  ;;  %v2286_v14 = vld [vmem:[#allocation7 + $0x1d0] sm:$0xff]  ;;  %189 = vmatprep.subr.mxu1 %v2284_v13 }
  0x21   :  { %119 = vmatpush1.msra.mxu0 %v2258_v4  ;;  %v2289_v15 = vld [vmem:[#allocation7 + $0x148] sm:$0xff]  ;;  %v2292_v16 = vld [vmem:[#allocation7 + $0x1b8] sm:$0xff]  ;;  %v2295_v17 = vld [vmem:[#allocation7 + $0x140] sm:$0xff]  ;;  %190 = vmatpush1.msra.mxu1 %v2286_v14  ;;  %p2201_p13 = por %p2200_p12, %p2199_p11 }
  0x22   :  { %120 = vmatprep.subr.mxu0 %v2261_v5  ;;  %v2298_v18 = vld [vmem:[#allocation7 + $0x1b0] sm:$0xff]  ;;  %v2300_v19 = vld [vmem:[#allocation7 + $0x198] sm:$0xff]  ;;  %v2303_v20 = vld [vmem:[#allocation7 + $0x128] sm:$0xff]  ;;  %191 = vmatprep.subr.mxu1 %v2292_v16 }
  0x23   :  { %121 = vmatpush1.msra.mxu0 %v2264_v6  ;;  %v2306_v21 = vld [vmem:[#allocation7 + $0x190] sm:$0xff]  ;;  %v2309_v22 = vld [vmem:[#allocation7 + $0x120] sm:$0xff]  ;;  %192 = vmatpush1.msra.mxu1 %v2298_v18  ;;  %v2312_v23 = vld [vmem:[#allocation7 + $0x178] sm:$0xff]  ;;  %p2202_p0 = pnand %p2201_p13, %p2195_p10 }
  0x24   :  { %122 = vmatprep.subr.mxu0 %v2267_v7  ;;  %v2315_v24 = vld [vmem:[#allocation7 + $0x108] sm:$0xff]  ;;  %193 = vmatprep.subr.mxu1 %v2300_v19  ;;  %v2318_v25 = vld [vmem:[#allocation7 + $0x170] sm:$0xff]  ;;  %v2321_v26 = vld [vmem:[#allocation7 + $0x100] sm:$0xff] }
  0x25   :  { %123 = vmatpush1.msra.mxu0 %v2270_v8  ;;  %194 = vmatpush1.msra.mxu1 %v2306_v21  ;;  %v2324_v27 = vld [vmem:[#allocation7 + $0x158] sm:$0xff]  ;;  %v2327_v28 = vld [vmem:[#allocation7 + $0xe8] sm:$0xff]  ;;  %v2330_v29 = vld [vmem:[#allocation7 + $0x150] sm:$0xff] }
  0x26   :  { %124 = vmatprep.subr.mxu0 %v2275_v10  ;;  %195 = vmatprep.subr.mxu1 %v2312_v23  ;;  %v2333_v30 = vld [vmem:[#allocation7 + $0xe0] sm:$0xff]  ;;  %v2336_v31 = vld [vmem:[#allocation7 + $0x138] sm:$0xff]  ;;  %v2339_v32 = vld [vmem:[#allocation7 + $0xc8] sm:$0xff] }
  0x27   :  { %125 = vmatpush1.msra.mxu0 %v2281_v12  ;;  %196 = vmatpush1.msra.mxu1 %v2318_v25  ;;  %v2342_v33 = vld [vmem:[#allocation7 + $0x130] sm:$0xff]  ;;  %v2345_v34 = vld [vmem:[#allocation7 + $0xc0] sm:$0xff]  ;;  %v2348_v35 = vld [vmem:[#allocation7 + $0x118] sm:$0xff] }
  0x28   :  { %126 = vmatprep.subr.mxu0 %v2289_v15  ;;  %197 = vmatprep.subr.mxu1 %v2324_v27  ;;  %v2351_v36 = vld [vmem:[#allocation7 + $0xa8] sm:$0xff]  ;;  %v2354_v37 = vld [vmem:[#allocation7 + $0x110] sm:$0xff]  ;;  %v2357_v38 = vld [vmem:[#allocation7 + $0xa0] sm:$0xff] }
  0x29   :  { %127 = vmatpush1.msra.mxu0 %v2295_v17  ;;  %198 = vmatpush1.msra.mxu1 %v2330_v29  ;;  %v2360_v39 = vld [vmem:[#allocation7 + $0xf8] sm:$0xff]  ;;  %v2363_v40 = vld [vmem:[#allocation7 + $0x88] sm:$0xff]  ;;  %v2366_v41 = vld [vmem:[#allocation7 + $0xf0] sm:$0xff] }
  0x2a   :  { %128 = vmatprep.subr.mxu0 %v2303_v20  ;;  %199 = vmatprep.subr.mxu1 %v2336_v31  ;;  %v2369_v42 = vld [vmem:[#allocation7 + $0x80] sm:$0xff]  ;;  %v2372_v43 = vld [vmem:[#allocation7 + $0xd8] sm:$0xff]  ;;  %v2375_v44 = vld [vmem:[#allocation7 + $0x68] sm:$0xff] }
  0x2b   :  { %129 = vmatpush1.msra.mxu0 %v2309_v22  ;;  %200 = vmatpush1.msra.mxu1 %v2342_v33  ;;  %3120 = vst [vmem:[#allocation15_spill] sm:$0xff] %v2375_v44  ;;  %v2378_v45 = vld [vmem:[#allocation7 + $0xd0] sm:$0xff]  ;;  %v2381_v46 = vld [vmem:[#allocation7 + $0x60] sm:$0xff]  ;;  %v2384_v47 = vld [vmem:[#allocation7 + $0xb8] sm:$0xff] }
  0x2c   :  { %130 = vmatprep.subr.mxu0 %v2315_v24  ;;  %201 = vmatprep.subr.mxu1 %v2348_v35  ;;  %3121 = vst [vmem:[#allocation16_spill] sm:$0xff] %v2381_v46  ;;  %v2387_v48 = vld [vmem:[#allocation7 + $0x48] sm:$0xff]  ;;  %v2390_v49 = vld [vmem:[#allocation7 + $0xb0] sm:$0xff]  ;;  %v2393_v50 = vld [vmem:[#allocation7 + $0x40] sm:$0xff] }
  0x2d   :  { %131 = vmatpush1.msra.mxu0 %v2321_v26  ;;  %202 = vmatpush1.msra.mxu1 %v2354_v37  ;;  %3122 = vst [vmem:[#allocation17_spill] sm:$0xff] %v2387_v48  ;;  %3123 = vst [vmem:[#allocation18_spill] sm:$0xff] %v2393_v50  ;;  %v2396_v51 = vld [vmem:[#allocation7 + $0x98] sm:$0xff]  ;;  %v2399_v52 = vld [vmem:[#allocation7 + $0x28] sm:$0xff] }
  0x2e   :  { %132 = vmatprep.subr.mxu0 %v2327_v28  ;;  %203 = vmatprep.subr.mxu1 %v2360_v39  ;;  %3124 = vst [vmem:[#allocation19_spill] sm:$0xff] %v2399_v52  ;;  %v2402_v53 = vld [vmem:[#allocation7 + $0x90] sm:$0xff]  ;;  %v2405_v54 = vld [vmem:[#allocation7 + $0x20] sm:$0xff]  ;;  %v2408_v55 = vld [vmem:[#allocation7 + $0x78] sm:$0xff] }
  0x2f   :  { %133 = vmatpush1.msra.mxu0 %v2333_v30  ;;  %204 = vmatpush1.msra.mxu1 %v2366_v41  ;;  %3125 = vst [vmem:[#allocation20_spill] sm:$0xff] %v2405_v54  ;;  %3126 = vst [vmem:[#allocation21_spill] sm:$0xff] %v2408_v55  ;;  %v2411_v56 = vld [vmem:[#allocation7 + $0x8] sm:$0xff]  ;;  %v2414_v57 = vld [vmem:[#allocation7 + $0x70] sm:$0xff] }
  0x30   :  { %134 = vmatprep.subr.mxu0 %v2339_v32  ;;  %205 = vmatprep.subr.mxu1 %v2372_v43  ;;  %3127 = vst [vmem:[#allocation22_spill] sm:$0xff] %v2411_v56  ;;  %3128 = vst [vmem:[#allocation23_spill] sm:$0xff] %v2414_v57  ;;  %v2417_v58 = vld [vmem:[#allocation7] sm:$0xff]  ;;  %v2420_v59 = vld [vmem:[#allocation7 + $0x58] sm:$0xff] }
  0x31   :  { %135 = vmatpush1.msra.mxu0 %v2345_v34  ;;  %206 = vmatpush1.msra.mxu1 %v2378_v45  ;;  %3129 = vst [vmem:[#allocation24_spill] sm:$0xff] %v2417_v58  ;;  %3130 = vst [vmem:[#allocation25_spill] sm:$0xff] %v2420_v59  ;;  %v2424_v60 = vld [vmem:[#allocation7 + $0x50] sm:$0xff]  ;;  %v2428_v61 = vld [vmem:[#allocation7 + $0x38] sm:$0xff] }
  0x32   :  { %136 = vmatprep.subr.mxu0 %v2351_v36  ;;  %207 = vmatprep.subr.mxu1 %v2384_v47  ;;  %3131 = vst [vmem:[#allocation26_spill] sm:$0xff] %v2424_v60  ;;  %3132 = vst [vmem:[#allocation27_spill] sm:$0xff] %v2428_v61  ;;  %v2432_v62 = vld [vmem:[#allocation7 + $0x30] sm:$0xff]  ;;  %v2436_v63 = vld [vmem:[#allocation7 + $0x18] sm:$0xff] }
  0x33   :  { %137 = vmatpush1.msra.mxu0 %v2357_v38  ;;  %208 = vmatpush1.msra.mxu1 %v2390_v49  ;;  %3133 = vst [vmem:[#allocation28_spill] sm:$0xff] %v2432_v62  ;;  %3134 = vst [vmem:[#allocation29_spill] sm:$0xff] %v2436_v63 }
  0x34   :  { %138 = vmatprep.subr.mxu0 %v2363_v40  ;;  %209 = vmatprep.subr.mxu1 %v2396_v51 }
  0x35   :  { %139 = vmatpush1.msra.mxu0 %v2369_v42  ;;  %210 = vmatpush1.msra.mxu1 %v2402_v53 }
  0x36   :  { %140 = vmatprep.subr.mxu0 %v2375_v44  ;;  %211 = vmatprep.subr.mxu1 %v2408_v55 }
  0x37   :  { %141 = vmatpush1.msra.mxu0 %v2381_v46  ;;  %212 = vmatpush1.msra.mxu1 %v2414_v57 }
  0x38   :  { %142 = vmatprep.subr.mxu0 %v2387_v48  ;;  %213 = vmatprep.subr.mxu1 %v2420_v59 }
  0x39   :  { %143 = vmatpush1.msra.mxu0 %v2393_v50  ;;  %214 = vmatpush1.msra.mxu1 %v2424_v60 }
  0x3a   :  { %144 = vmatprep.subr.mxu0 %v2399_v52  ;;  %215 = vmatprep.subr.mxu1 %v2428_v61 }
  0x3b   :  { %145 = vmatpush1.msra.mxu0 %v2405_v54  ;;  %v2439_v54 = vld [vmem:[#allocation7 + $0x10] sm:$0xff]  ;;  %216 = vmatpush1.msra.mxu1 %v2432_v62 }
  0x3c   :  { %146 = vmatprep.subr.mxu0 %v2411_v56  ;;  %3135 = vst [vmem:[#allocation30_spill] sm:$0xff] %v2439_v54  ;;  %217 = vmatprep.subr.mxu1 %v2436_v63 }
  0x3d   :  { %147 = vmatpush1.msra.mxu0 %v2417_v58  ;;  %218 = vmatpush1.msra.mxu1 %v2439_v54 }
  0x3e   :  { %181 = vmatmul.mubr.f32.vlgmr.msra.gmra.mxu0 %v3048_v0  ;;  %356 = vmatprep.subr.mxu0 %v2251_v1 }
  0x3f   :  { %357 = vmatpush1.msra.mxu0 %v2253_v2  ;;  %252 = vmatmul.mubr.f32.vlgmr.msra.gmra.mxu1 %v3048_v0  ;;  %v3136_v0 = vld [vmem:[#allocation20_spill] sm:$0xff] }
  0x40   :  { %358 = vmatprep.subr.mxu0 %v2255_v3  ;;  %427 = vmatprep.subr.mxu1 %v2272_v9 }
  0x41   :  { %359 = vmatpush1.msra.mxu0 %v2258_v4  ;;  %428 = vmatpush1.msra.mxu1 %v2278_v11 }
  0x42   :  { %360 = vmatprep.subr.mxu0 %v2261_v5  ;;  %429 = vmatprep.subr.mxu1 %v2284_v13 }
  0x43   :  { %361 = vmatpush1.msra.mxu0 %v2264_v6  ;;  %430 = vmatpush1.msra.mxu1 %v2286_v14 }
  0x44   :  { %362 = vmatprep.subr.mxu0 %v2267_v7  ;;  %431 = vmatprep.subr.mxu1 %v2292_v16 }
  0x45   :  { %363 = vmatpush1.msra.mxu0 %v2270_v8  ;;  %432 = vmatpush1.msra.mxu1 %v2298_v18 }
  0x46   :  { %364 = vmatprep.subr.mxu0 %v2275_v10  ;;  %433 = vmatprep.subr.mxu1 %v2300_v19 }
  0x47   :  { %365 = vmatpush1.msra.mxu0 %v2281_v12  ;;  %434 = vmatpush1.msra.mxu1 %v2306_v21 }
  0x48   :  { %366 = vmatprep.subr.mxu0 %v2289_v15  ;;  %435 = vmatprep.subr.mxu1 %v2312_v23 }
  0x49   :  { %367 = vmatpush1.msra.mxu0 %v2295_v17  ;;  %436 = vmatpush1.msra.mxu1 %v2318_v25 }
  0x4a   :  { %368 = vmatprep.subr.mxu0 %v2303_v20  ;;  %437 = vmatprep.subr.mxu1 %v2324_v27 }
  0x4b   :  { %369 = vmatpush1.msra.mxu0 %v2309_v22  ;;  %438 = vmatpush1.msra.mxu1 %v2330_v29 }
  0x4c   :  { %370 = vmatprep.subr.mxu0 %v2315_v24  ;;  %439 = vmatprep.subr.mxu1 %v2336_v31 }
  0x4d   :  { %371 = vmatpush1.msra.mxu0 %v2321_v26  ;;  %440 = vmatpush1.msra.mxu1 %v2342_v33 }
  0x4e   :  { %372 = vmatprep.subr.mxu0 %v2327_v28  ;;  %441 = vmatprep.subr.mxu1 %v2348_v35 }
  0x4f   :  { %373 = vmatpush1.msra.mxu0 %v2333_v30  ;;  %442 = vmatpush1.msra.mxu1 %v2354_v37 }
  0x50   :  { %374 = vmatprep.subr.mxu0 %v2339_v32  ;;  %443 = vmatprep.subr.mxu1 %v2360_v39 }
  0x51   :  { %375 = vmatpush1.msra.mxu0 %v2345_v34  ;;  %444 = vmatpush1.msra.mxu1 %v2366_v41 }
  0x52   :  { %376 = vmatprep.subr.mxu0 %v2351_v36  ;;  %445 = vmatprep.subr.mxu1 %v2372_v43 }
  0x53   :  { %377 = vmatpush1.msra.mxu0 %v2357_v38  ;;  %446 = vmatpush1.msra.mxu1 %v2378_v45 }
  0x54   :  { %378 = vmatprep.subr.mxu0 %v2363_v40  ;;  %447 = vmatprep.subr.mxu1 %v2384_v47 }
  0x55   :  { %379 = vmatpush1.msra.mxu0 %v2369_v42  ;;  %448 = vmatpush1.msra.mxu1 %v2390_v49 }
  0x56   :  { %380 = vmatprep.subr.mxu0 %v2375_v44  ;;  %449 = vmatprep.subr.mxu1 %v2396_v51 }
  0x57   :  { %381 = vmatpush1.msra.mxu0 %v2381_v46  ;;  %450 = vmatpush1.msra.mxu1 %v2402_v53 }
  0x58   :  { %382 = vmatprep.subr.mxu0 %v2387_v48  ;;  %451 = vmatprep.subr.mxu1 %v2408_v55  ;;  %v3137_v48 = vmov 0.0  }
  0x59   :  { %383 = vmatpush1.msra.mxu0 %v2393_v50  ;;  %452 = vmatpush1.msra.mxu1 %v2414_v57 }
  0x5a   :  { %384 = vmatprep.subr.mxu0 %v2399_v52  ;;  %453 = vmatprep.subr.mxu1 %v2420_v59  ;;  %v49_v52 = vld [vmem:[#allocation4 + $0x8] sm:$0xff]  ;;  %v50_v59 = vld [vmem:[#allocation4 + $0x10] sm:$0xff] }
  0x5b   :  { %385 = vmatpush1.msra.mxu0 %v3136_v0  ;;  %454 = vmatpush1.msra.mxu1 %v2424_v60  ;;  %v48_v0 = vld [vmem:[#allocation4] sm:$0xff] }
  0x5c   :  { %386 = vmatprep.subr.mxu0 %v2411_v56  ;;  %455 = vmatprep.subr.mxu1 %v2428_v61 }
  0x5d   :  { %387 = vmatpush1.msra.mxu0 %v2417_v58  ;;  %456 = vmatpush1.msra.mxu1 %v2432_v62 }
  0x5e   :  { %420 = vmatprep.mubr.f32.mxu0 %v3137_v48  ;;  %457 = vmatprep.subr.mxu1 %v2436_v63 }
  0x5f   :  { %491 = vmatprep.mubr.f32.mxu1 %v3137_v48  ;;  %458 = vmatpush1.msra.mxu1 %v2439_v54  ;;  %v51_v48 = vld [vmem:[#allocation4 + $0x18] sm:$0xff] }
  0x60   :  { %597 = vmatprep.subr.mxu0 %v2251_v1  ;;  %668 = vmatprep.subr.mxu1 %v2272_v9 }
  0xfe   :  { %v182_v56 = vpop.f32.mrf.mxu0 }
  0xff   :  { %v258_v61 = vadd.f32 %v182_v56, %v48_v0  ;;  %v253_v63 = vpop.f32.mrf.mxu1 }
 0x100   :  { %v184_v60 = vpop.f32.mrf.mxu0  ;;  %v260_v57 = vadd.f32 %v253_v63, %v50_v59  ;;  %v3154_v63 = vld [vmem:[#allocation30_spill] sm:$0xff] }
 0x101   :  { %v1994_v58 = vmul.f32 -1.442695, %v258_v61  ;;  %v259_v50 = vadd.f32 %v184_v60, %v49_v52  ;;  %v255_v46 = vpop.f32.mrf.mxu1 }
 0x102   :  { %v1996_v54 = vmul.f32 -1.442695, %v260_v57  ;;  %v261_v55 = vadd.f32 %v255_v46, %v51_v48  ;;  %v3153_v57 = vmov 0.0  }
 0x103   :  { %2026 = vpow2.f32 %v1994_v58  ;;  %v1995_v62 = vmul.f32 -1.442695, %v259_v50 }
 0x105   :  { %2028 = vpow2.f32 %v1995_v62 }
 0x106   :  { %2030 = vpow2.f32 %v1996_v54  ;;  %v3151_v54 = vld [vmem:[#allocation29_spill] sm:$0xff] }
 0x107   :  { %2032 = vtanh.f32 %v261_v55  ;;  %v3152_v55 = vld [vmem:[#allocation24_spill] sm:$0xff] }
 0x110   :  { %v2027_v1 = vpop.eup %2026 }
 0x111   :  { %v271_v44 = vadd.f32 1.0, %v2027_v1 }
 0x112   :  { %v2029_v9 = vpop.eup %2028 }
 0x113   :  { %2034 = vrcp.f32 %v271_v44  ;;  %v272_v0 = vadd.f32 1.0, %v2029_v9  ;;  %v2031_v56 = vpop.eup %2030  ;;  %v3138_v9 = vld [vmem:[#allocation15_spill] sm:$0xff]  ;;  %v3150_v44 = vld [vmem:[#allocation22_spill] sm:$0xff] }
 0x114   :  { %v2033_v52 = vpop.eup %2032  ;;  %v273_v60 = vadd.f32 1.0, %v2031_v56  ;;  %v3156_v56 = vld [vmem:[#allocation14_spill] sm:$0xff] }
 0x115   :  { %2036 = vrcp.f32 %v272_v0  ;;  %v3155_v0 = vld [vmem:[#allocation13_spill] sm:$0xff] }
 0x116   :  { %2038 = vrcp.f32 %v273_v60 }
 0x120   :  { %v2035_v58 = vpop.eup %2034 }
 0x121   :  { %v282_v62 = vmul.f32 %v2035_v58, %v2033_v52  ;;  %v288_v52 = vld [vmem:[#allocation4 + $0x20] sm:$0xff] }
 0x122   :  { %v2037_v50 = vpop.eup %2036 }
 0x123   :  { %v281_v61 = vmul.f32 0.0, %v2037_v50  ;;  %v2039_v46 = vpop.eup %2038  ;;  %v289_v50 = vld [vmem:[#allocation4 + $0x28] sm:$0xff] }
 0x125   :  { %v2513_v59 = vadd.f32 %v282_v62, %v281_v61 }
 0x127   :  { %2040 = vtanh.f32 %v2513_v59 }
 0x134   :  { %v2041_v1 = vpop.eup %2040 }
 0x135   :  { %v285_v48 = vmul.f32 %v2041_v1, %v2039_v46 }
 0x137   :  { %286 = vst [vmem:[#allocation9] sm:$0xff] %v285_v48  ;;  %421 = vmatmul.mubr.f32.vlgmr.msra.gmra.mxu0 %v285_v48  ;;  %492 = vmatmul.mubr.f32.vlgmr.msra.gmra.mxu1 %v285_v48  ;;  %v290_v48 = vld [vmem:[#allocation4 + $0x30] sm:$0xff] }
 0x138   :  { %598 = vmatpush1.msra.mxu0 %v2253_v2  ;;  %669 = vmatpush1.msra.mxu1 %v2278_v11 }
 0x139   :  { %599 = vmatprep.subr.mxu0 %v2255_v3  ;;  %670 = vmatprep.subr.mxu1 %v2284_v13 }
 0x13a   :  { %600 = vmatpush1.msra.mxu0 %v2258_v4  ;;  %671 = vmatpush1.msra.mxu1 %v2286_v14 }
 0x13b   :  { %601 = vmatprep.subr.mxu0 %v2261_v5  ;;  %672 = vmatprep.subr.mxu1 %v2292_v16 }
 0x13c   :  { %602 = vmatpush1.msra.mxu0 %v2264_v6  ;;  %673 = vmatpush1.msra.mxu1 %v2298_v18 }
 0x13d   :  { %603 = vmatprep.subr.mxu0 %v2267_v7  ;;  %674 = vmatprep.subr.mxu1 %v2300_v19 }
 0x13e   :  { %604 = vmatpush1.msra.mxu0 %v2270_v8  ;;  %675 = vmatpush1.msra.mxu1 %v2306_v21 }
 0x13f   :  { %605 = vmatprep.subr.mxu0 %v2275_v10  ;;  %676 = vmatprep.subr.mxu1 %v2312_v23 }
 0x140   :  { %606 = vmatpush1.msra.mxu0 %v2281_v12  ;;  %677 = vmatpush1.msra.mxu1 %v2318_v25 }
 0x141   :  { %607 = vmatprep.subr.mxu0 %v2289_v15  ;;  %678 = vmatprep.subr.mxu1 %v2324_v27 }
 0x142   :  { %608 = vmatpush1.msra.mxu0 %v2295_v17  ;;  %679 = vmatpush1.msra.mxu1 %v2330_v29 }
 0x143   :  { %609 = vmatprep.subr.mxu0 %v2303_v20  ;;  %680 = vmatprep.subr.mxu1 %v2336_v31 }
 0x144   :  { %610 = vmatpush1.msra.mxu0 %v2309_v22  ;;  %681 = vmatpush1.msra.mxu1 %v2342_v33  ;;  %v3139_v22 = vld [vmem:[#allocation21_spill] sm:$0xff] }
 0x145   :  { %611 = vmatprep.subr.mxu0 %v2315_v24  ;;  %682 = vmatprep.subr.mxu1 %v2348_v35  ;;  %v3140_v24 = vld [vmem:[#allocation16_spill] sm:$0xff] }
 0x146   :  { %612 = vmatpush1.msra.mxu0 %v2321_v26  ;;  %683 = vmatpush1.msra.mxu1 %v2354_v37  ;;  %v3141_v26 = vld [vmem:[#allocation23_spill] sm:$0xff] }
 0x147   :  { %613 = vmatprep.subr.mxu0 %v2327_v28  ;;  %684 = vmatprep.subr.mxu1 %v2360_v39  ;;  %v3142_v28 = vld [vmem:[#allocation17_spill] sm:$0xff] }
 0x148   :  { %614 = vmatpush1.msra.mxu0 %v2333_v30  ;;  %685 = vmatpush1.msra.mxu1 %v2366_v41  ;;  %v3143_v30 = vld [vmem:[#allocation25_spill] sm:$0xff] }
 0x149   :  { %615 = vmatprep.subr.mxu0 %v2339_v32  ;;  %686 = vmatprep.subr.mxu1 %v2372_v43  ;;  %v3144_v32 = vld [vmem:[#allocation18_spill] sm:$0xff] }
 0x14a   :  { %616 = vmatpush1.msra.mxu0 %v2345_v34  ;;  %687 = vmatpush1.msra.mxu1 %v2378_v45  ;;  %v3145_v34 = vld [vmem:[#allocation26_spill] sm:$0xff] }
 0x14b   :  { %617 = vmatprep.subr.mxu0 %v2351_v36  ;;  %688 = vmatprep.subr.mxu1 %v2384_v47  ;;  %v3146_v36 = vld [vmem:[#allocation19_spill] sm:$0xff] }
 0x14c   :  { %618 = vmatpush1.msra.mxu0 %v2357_v38  ;;  %689 = vmatpush1.msra.mxu1 %v2390_v49  ;;  %v3147_v38 = vld [vmem:[#allocation27_spill] sm:$0xff] }
 0x14d   :  { %619 = vmatprep.subr.mxu0 %v2363_v40  ;;  %690 = vmatprep.subr.mxu1 %v2396_v51  ;;  %v3148_v40 = vld [vmem:[#allocation20_spill] sm:$0xff] }
 0x14e   :  { %620 = vmatpush1.msra.mxu0 %v2369_v42  ;;  %691 = vmatpush1.msra.mxu1 %v2402_v53  ;;  %v3149_v42 = vld [vmem:[#allocation28_spill] sm:$0xff] }
 0x14f   :  { %621 = vmatprep.subr.mxu0 %v3138_v9  ;;  %692 = vmatprep.subr.mxu1 %v3139_v22 }
 0x150   :  { %622 = vmatpush1.msra.mxu0 %v3140_v24  ;;  %693 = vmatpush1.msra.mxu1 %v3141_v26 }
 0x151   :  { %623 = vmatprep.subr.mxu0 %v3142_v28  ;;  %694 = vmatprep.subr.mxu1 %v3143_v30  ;;  %v291_v28 = vld [vmem:[#allocation4 + $0x38] sm:$0xff] }
 0x152   :  { %624 = vmatpush1.msra.mxu0 %v3144_v32  ;;  %695 = vmatpush1.msra.mxu1 %v3145_v34 }
 0x153   :  { %625 = vmatprep.subr.mxu0 %v3146_v36  ;;  %696 = vmatprep.subr.mxu1 %v3147_v38 }
 0x154   :  { %626 = vmatpush1.msra.mxu0 %v3148_v40  ;;  %697 = vmatpush1.msra.mxu1 %v3149_v42 }
 0x155   :  { %627 = vmatprep.subr.mxu0 %v3150_v44  ;;  %698 = vmatprep.subr.mxu1 %v3151_v54 }
 0x156   :  { %628 = vmatpush1.msra.mxu0 %v3152_v55  ;;  %661 = vmatprep.mubr.f32.mxu0 %v3153_v57 }
 0x157   :  { %699 = vmatpush1.msra.mxu1 %v3154_v63  ;;  %732 = vmatprep.mubr.f32.mxu1 %v3153_v57 }
 0x158   :  { %838 = vmatprep.subr.mxu0 %v3155_v0  ;;  %909 = vmatprep.subr.mxu1 %v3156_v56 }
 0x1f7   :  { %v422_v58 = vpop.f32.mrf.mxu0  ;;  %v493_v9 = vpop.f32.mrf.mxu1 }
 0x1f8   :  { %v498_v60 = vadd.f32 %v422_v58, %v288_v52  ;;  %v500_v24 = vadd.f32 %v493_v9, %v290_v48 }
 0x1f9   :  { %v424_v61 = vpop.f32.mrf.mxu0  ;;  %v495_v32 = vpop.f32.mrf.mxu1 }
 0x1fa   :  { %v1997_v62 = vmul.f32 -1.442695, %v498_v60  ;;  %v499_v46 = vadd.f32 %v424_v61, %v289_v50  ;;  %v1999_v36 = vmul.f32 -1.442695, %v500_v24  ;;  %v501_v44 = vadd.f32 %v495_v32, %v291_v28 }
 0x1fc   :  { %2042 = vpow2.f32 %v1997_v62  ;;  %v1998_v1 = vmul.f32 -1.442695, %v499_v46 }
 0x1fe   :  { %2044 = vpow2.f32 %v1998_v1 }
 0x1ff   :  { %2046 = vpow2.f32 %v1999_v36 }
 0x209   :  { %v2043_v40 = vpop.eup %2042 }
 0x20a   :  { %v511_v55 = vadd.f32 1.0, %v2043_v40 }
 0x20b   :  { %v2045_v0 = vpop.eup %2044 }
 0x20c   :  { %2048 = vrcp.f32 %v511_v55  ;;  %v512_v56 = vadd.f32 1.0, %v2045_v0  ;;  %v2047_v52 = vpop.eup %2046  ;;  %v2694_v55 = vld [vmem:[#allocation7 + $0x1e8] sm:$0xff]  ;;  %v2696_v0 = vld [vmem:[#allocation7 + $0x1f8] sm:$0xff] }
 0x20d   :  { %2050 = vtanh.f32 %v501_v44  ;;  %v513_v61 = vadd.f32 1.0, %v2047_v52  ;;  %3166 = vst [vmem:[#allocation27_spill] sm:$0xff] %v2694_v55  ;;  %3167 = vst [vmem:[#allocation20_spill] sm:$0xff] %v2696_v0  ;;  %v2702_v52 = vld [vmem:[#allocation7 + $0x1f0] sm:$0xff] }
 0x20e   :  { %2052 = vrcp.f32 %v512_v56  ;;  %v2700_v56 = vld [vmem:[#allocation7 + $0x1e0] sm:$0xff] }
 0x20f   :  { %2054 = vrcp.f32 %v513_v61  ;;  %v2714_v61 = vld [vmem:[#allocation7 + $0x1d0] sm:$0xff] }
 0x219   :  { %v2049_v58 = vpop.eup %2048 }
 0x21a   :  { %v2051_v50 = vpop.eup %2050 }
 0x21b   :  { %v2053_v60 = vpop.eup %2052  ;;  %v522_v46 = vmul.f32 %v2051_v50, %v2049_v58  ;;  %v2706_v58 = vld [vmem:[#allocation7 + $0x1c8] sm:$0xff]  ;;  %v2708_v50 = vld [vmem:[#allocation7 + $0x1d8] sm:$0xff] }
 0x21c   :  { %v521_v62 = vmul.f32 %v2053_v60, %v2513_v59  ;;  %v2055_v48 = vpop.eup %2054  ;;  %v2712_v60 = vld [vmem:[#allocation7 + $0x1c0] sm:$0xff] }
 0x21e   :  { %v2583_v1 = vadd.f32 %v522_v46, %v521_v62  ;;  %v2718_v62 = vld [vmem:[#allocation7 + $0x1a8] sm:$0xff]  ;;  %v2720_v46 = vld [vmem:[#allocation7 + $0x1b8] sm:$0xff] }
 0x220   :  { %2056 = vtanh.f32 %v2583_v1 }
 0x22d   :  { %v2057_v9 = vpop.eup %2056 }
 0x22e   :  { %v525_v24 = vmul.f32 %v2057_v9, %v2055_v48  ;;  %v2726_v48 = vld [vmem:[#allocation7 + $0x1b0] sm:$0xff]  ;;  %v2730_v9 = vld [vmem:[#allocation7 + $0x188] sm:$0xff] }
 0x230   :  { %527 = vst [vmem:[#allocation9 + $0x8] sm:$0xff] %v525_v24  ;;  %662 = vmatmul.mubr.f32.vlgmr.msra.gmra.mxu0 %v525_v24  ;;  %733 = vmatmul.mubr.f32.vlgmr.msra.gmra.mxu1 %v525_v24  ;;  %v2732_v24 = vld [vmem:[#allocation7 + $0x198] sm:$0xff] }
 0x231   :  { %839 = vmatpush1.msra.mxu0 %v2253_v2  ;;  %910 = vmatpush1.msra.mxu1 %v2278_v11  ;;  %v2631_v2 = vld [vmem:[#allocation7 + $0x120] sm:$0xff] }
 0x232   :  { %840 = vmatprep.subr.mxu0 %v2255_v3  ;;  %911 = vmatprep.subr.mxu1 %v2284_v13  ;;  %v2634_v3 = vld [vmem:[#allocation7 + $0x108] sm:$0xff]  ;;  %v2653_v11 = vld [vmem:[#allocation7 + $0xa0] sm:$0xff] }
 0x233   :  { %841 = vmatpush1.msra.mxu0 %v2258_v4  ;;  %912 = vmatpush1.msra.mxu1 %v2286_v14  ;;  %v2636_v4 = vld [vmem:[#allocation7 + $0x100] sm:$0xff]  ;;  %v2662_v14 = vld [vmem:[#allocation7 + $0x68] sm:$0xff] }
 0x234   :  { %842 = vmatprep.subr.mxu0 %v2261_v5  ;;  %913 = vmatprep.subr.mxu1 %v2292_v16  ;;  %v2638_v5 = vld [vmem:[#allocation7 + $0xe8] sm:$0xff]  ;;  %v2659_v13 = vld [vmem:[#allocation7 + $0x80] sm:$0xff]  ;;  %3158 = vst [vmem:[#allocation21_spill] sm:$0xff] %v2662_v14 }
 0x235   :  { %843 = vmatpush1.msra.mxu0 %v2264_v6  ;;  %914 = vmatpush1.msra.mxu1 %v2298_v18  ;;  %v2641_v6 = vld [vmem:[#allocation7 + $0xe0] sm:$0xff]  ;;  %3157 = vst [vmem:[#allocation15_spill] sm:$0xff] %v2659_v13  ;;  %v2668_v16 = vld [vmem:[#allocation7 + $0x48] sm:$0xff] }
 0x236   :  { %844 = vmatprep.subr.mxu0 %v2267_v7  ;;  %915 = vmatprep.subr.mxu1 %v2300_v19  ;;  %v2644_v7 = vld [vmem:[#allocation7 + $0xc8] sm:$0xff]  ;;  %3160 = vst [vmem:[#allocation23_spill] sm:$0xff] %v2668_v16  ;;  %v2677_v19 = vld [vmem:[#allocation7 + $0x20] sm:$0xff] }
 0x237   :  { %845 = vmatpush1.msra.mxu0 %v2270_v8  ;;  %916 = vmatpush1.msra.mxu1 %v2306_v21  ;;  %v2647_v8 = vld [vmem:[#allocation7 + $0xc0] sm:$0xff]  ;;  %v2674_v18 = vld [vmem:[#allocation7 + $0x28] sm:$0xff]  ;;  %3163 = vst [vmem:[#allocation18_spill] sm:$0xff] %v2677_v19 }
 0x238   :  { %846 = vmatprep.subr.mxu0 %v2275_v10  ;;  %917 = vmatprep.subr.mxu1 %v2312_v23  ;;  %v2650_v10 = vld [vmem:[#allocation7 + $0xa8] sm:$0xff]  ;;  %3162 = vst [vmem:[#allocation25_spill] sm:$0xff] %v2674_v18  ;;  %v2683_v21 = vld [vmem:[#allocation7] sm:$0xff] }
 0x239   :  { %847 = vmatpush1.msra.mxu0 %v2281_v12  ;;  %918 = vmatpush1.msra.mxu1 %v2318_v25  ;;  %v2656_v12 = vld [vmem:[#allocation7 + $0x88] sm:$0xff]  ;;  %3165 = vst [vmem:[#allocation19_spill] sm:$0xff] %v2683_v21  ;;  %v529_v23 = vld [vmem:[#allocation4 + $0x40] sm:$0xff] }
 0x23a   :  { %848 = vmatprep.subr.mxu0 %v2289_v15  ;;  %919 = vmatprep.subr.mxu1 %v2324_v27  ;;  %v2665_v15 = vld [vmem:[#allocation7 + $0x60] sm:$0xff]  ;;  %v530_v27 = vld [vmem:[#allocation4 + $0x48] sm:$0xff] }
 0x23b   :  { %849 = vmatpush1.msra.mxu0 %v2295_v17  ;;  %920 = vmatpush1.msra.mxu1 %v2330_v29  ;;  %3159 = vst [vmem:[#allocation16_spill] sm:$0xff] %v2665_v15  ;;  %v2671_v17 = vld [vmem:[#allocation7 + $0x40] sm:$0xff] }
 0x23c   :  { %850 = vmatprep.subr.mxu0 %v2303_v20  ;;  %921 = vmatprep.subr.mxu1 %v2336_v31  ;;  %3161 = vst [vmem:[#allocation17_spill] sm:$0xff] %v2671_v17  ;;  %v2680_v20 = vld [vmem:[#allocation7 + $0x8] sm:$0xff] }
 0x23d   :  { %922 = vmatpush1.msra.mxu1 %v2342_v33  ;;  %902 = vmatprep.mubr.f32.mxu0 %v3153_v57  ;;  %3164 = vst [vmem:[#allocation26_spill] sm:$0xff] %v2680_v20 }
 0x23e   :  { %923 = vmatprep.subr.mxu1 %v2348_v35  ;;  %973 = vmatprep.mubr.f32.mxu1 %v3153_v57 }
 0x23f   :  { %924 = vmatpush1.msra.mxu1 %v2354_v37  ;;  %851 = vmatpush1.msra.mxu0 %v2631_v2 }
 0x240   :  { %925 = vmatprep.subr.mxu1 %v2360_v39  ;;  %852 = vmatprep.subr.mxu0 %v2634_v3  ;;  %v531_v39 = vld [vmem:[#allocation4 + $0x50] sm:$0xff] }
 0x241   :  { %926 = vmatpush1.msra.mxu1 %v2366_v41  ;;  %853 = vmatpush1.msra.mxu0 %v2636_v4 }
 0x242   :  { %927 = vmatprep.subr.mxu1 %v2372_v43  ;;  %854 = vmatprep.subr.mxu0 %v2638_v5 }
 0x243   :  { %928 = vmatpush1.msra.mxu1 %v2378_v45  ;;  %855 = vmatpush1.msra.mxu0 %v2641_v6  ;;  %v532_v45 = vld [vmem:[#allocation4 + $0x58] sm:$0xff] }
 0x244   :  { %929 = vmatprep.subr.mxu1 %v2384_v47  ;;  %856 = vmatprep.subr.mxu0 %v2644_v7 }
 0x245   :  { %930 = vmatpush1.msra.mxu1 %v2390_v49  ;;  %857 = vmatpush1.msra.mxu0 %v2647_v8 }
 0x246   :  { %931 = vmatprep.subr.mxu1 %v2396_v51  ;;  %858 = vmatprep.subr.mxu0 %v2650_v10 }
 0x247   :  { %932 = vmatpush1.msra.mxu1 %v2402_v53  ;;  %859 = vmatpush1.msra.mxu0 %v2653_v11 }
 0x248   :  { %933 = vmatprep.subr.mxu1 %v3139_v22  ;;  %860 = vmatprep.subr.mxu0 %v2656_v12 }
 0x249   :  { %934 = vmatpush1.msra.mxu1 %v3141_v26  ;;  %861 = vmatpush1.msra.mxu0 %v2659_v13 }
 0x24a   :  { %935 = vmatprep.subr.mxu1 %v3143_v30  ;;  %862 = vmatprep.subr.mxu0 %v2662_v14 }
 0x24b   :  { %936 = vmatpush1.msra.mxu1 %v3145_v34  ;;  %863 = vmatpush1.msra.mxu0 %v2665_v15 }
 0x24c   :  { %937 = vmatprep.subr.mxu1 %v3147_v38  ;;  %864 = vmatprep.subr.mxu0 %v2668_v16 }
 0x24d   :  { %938 = vmatpush1.msra.mxu1 %v3149_v42  ;;  %865 = vmatpush1.msra.mxu0 %v2671_v17 }
 0x24e   :  { %939 = vmatprep.subr.mxu1 %v3151_v54  ;;  %866 = vmatprep.subr.mxu0 %v2674_v18 }
 0x24f   :  { %940 = vmatpush1.msra.mxu1 %v3154_v63  ;;  %867 = vmatpush1.msra.mxu0 %v2677_v19 }
 0x250   :  { %868 = vmatprep.subr.mxu0 %v2680_v20  ;;  %1150 = vmatprep.subr.mxu1 %v2696_v0 }
 0x251   :  { %869 = vmatpush1.msra.mxu0 %v2683_v21 }
 0x252   :  { %1079 = vmatprep.subr.mxu0 %v2694_v55 }
 0x2f0   :  { %v663_v25 = vpop.f32.mrf.mxu0  ;;  %v734_v41 = vpop.f32.mrf.mxu1 }
 0x2f1   :  { %v739_v29 = vadd.f32 %v663_v25, %v529_v23  ;;  %v741_v43 = vadd.f32 %v734_v41, %v531_v39  ;;  %v2736_v23 = vld [vmem:[#allocation7 + $0x180] sm:$0xff]  ;;  %v2738_v25 = vld [vmem:[#allocation7 + $0x190] sm:$0xff] }
 0x2f2   :  { %v665_v31 = vpop.f32.mrf.mxu0  ;;  %v736_v47 = vpop.f32.mrf.mxu1  ;;  %v2760_v39 = vld [vmem:[#allocation7 + $0x140] sm:$0xff]  ;;  %v2762_v41 = vld [vmem:[#allocation7 + $0x150] sm:$0xff] }
 0x2f3   :  { %v2000_v33 = vmul.f32 -1.442695, %v739_v29  ;;  %v740_v35 = vadd.f32 %v665_v31, %v530_v27  ;;  %v2002_v49 = vmul.f32 -1.442695, %v741_v43  ;;  %v742_v53 = vadd.f32 %v736_v47, %v532_v45  ;;  %v2742_v27 = vld [vmem:[#allocation7 + $0x168] sm:$0xff]  ;;  %v2744_v29 = vld [vmem:[#allocation7 + $0x178] sm:$0xff] }
 0x2f4   :  { %v2748_v31 = vld [vmem:[#allocation7 + $0x160] sm:$0xff]  ;;  %v2766_v43 = vld [vmem:[#allocation7 + $0x128] sm:$0xff]  ;;  %v2768_v45 = vld [vmem:[#allocation7 + $0x138] sm:$0xff] }
 0x2f5   :  { %2058 = vpow2.f32 %v2000_v33  ;;  %v2001_v37 = vmul.f32 -1.442695, %v740_v35  ;;  %v2750_v33 = vld [vmem:[#allocation7 + $0x170] sm:$0xff]  ;;  %v2754_v35 = vld [vmem:[#allocation7 + $0x148] sm:$0xff] }
 0x2f6   :  { %v2772_v47 = vld [vmem:[#allocation7 + $0x130] sm:$0xff] }
 0x2f7   :  { %2060 = vpow2.f32 %v2001_v37  ;;  %v2756_v37 = vld [vmem:[#allocation7 + $0x158] sm:$0xff] }
 0x2f8   :  { %2062 = vpow2.f32 %v2002_v49  ;;  %v2776_v49 = vld [vmem:[#allocation7 + $0x118] sm:$0xff] }
 0x302   :  { %v2059_v51 = vpop.eup %2058 }
 0x303   :  { %v752_v59 = vadd.f32 1.0, %v2059_v51  ;;  %v2778_v51 = vld [vmem:[#allocation7 + $0x110] sm:$0xff] }
 0x304   :  { %v2061_v22 = vpop.eup %2060 }
 0x305   :  { %2064 = vrcp.f32 %v752_v59  ;;  %v753_v26 = vadd.f32 1.0, %v2061_v22  ;;  %v2063_v30 = vpop.eup %2062  ;;  %v2784_v59 = vld [vmem:[#allocation7 + $0xf0] sm:$0xff]  ;;  %v2788_v22 = vld [vmem:[#allocation7 + $0xd8] sm:$0xff] }
 0x306   :  { %2066 = vtanh.f32 %v742_v53  ;;  %v754_v54 = vadd.f32 1.0, %v2063_v30  ;;  %v2780_v53 = vld [vmem:[#allocation7 + $0xf8] sm:$0xff] }
 0x307   :  { %2068 = vrcp.f32 %v753_v26  ;;  %v2792_v26 = vld [vmem:[#allocation7 + $0xd0] sm:$0xff]  ;;  %v2796_v30 = vld [vmem:[#allocation7 + $0xb8] sm:$0xff] }
 0x308   :  { %2070 = vrcp.f32 %v754_v54  ;;  %v2812_v54 = vld [vmem:[#allocation7 + $0x78] sm:$0xff] }
 0x309   :  { %3169 = vst [vmem:[#allocation22_spill] sm:$0xff] %v2812_v54 }
 0x312   :  { %v2065_v34 = vpop.eup %2064 }
 0x313   :  { %v2067_v38 = vpop.eup %2066 }
 0x314   :  { %v2069_v42 = vpop.eup %2068  ;;  %v763_v28 = vmul.f32 %v2067_v38, %v2065_v34  ;;  %v2800_v34 = vld [vmem:[#allocation7 + $0xb0] sm:$0xff]  ;;  %v2804_v38 = vld [vmem:[#allocation7 + $0x98] sm:$0xff] }
 0x315   :  { %v762_v63 = vmul.f32 %v2069_v42, %v2583_v1  ;;  %v2071_v36 = vpop.eup %2070  ;;  %v2724_v1 = vld [vmem:[#allocation7 + $0x1a0] sm:$0xff]  ;;  %v2808_v42 = vld [vmem:[#allocation7 + $0x90] sm:$0xff] }
 0x316   :  { %3168 = vst [vmem:[#allocation28_spill] sm:$0xff] %v2808_v42 }
 0x317   :  { %v2689_v32 = vadd.f32 %v763_v28, %v762_v63  ;;  %v2816_v63 = vld [vmem:[#allocation7 + $0x70] sm:$0xff]  ;;  %v2820_v28 = vld [vmem:[#allocation7 + $0x58] sm:$0xff] }
 0x318   :  { %3170 = vst [vmem:[#allocation29_spill] sm:$0xff] %v2816_v63  ;;  %3171 = vst [vmem:[#allocation24_spill] sm:$0xff] %v2820_v28 }
 0x319   :  { %2072 = vtanh.f32 %v2689_v32 }
 0x326   :  { %v2073_v40 = vpop.eup %2072 }
 0x327   :  { %v766_v44 = vmul.f32 %v2073_v40, %v2071_v36  ;;  %v2824_v36 = vld [vmem:[#allocation7 + $0x50] sm:$0xff]  ;;  %v2828_v40 = vld [vmem:[#allocation7 + $0x38] sm:$0xff] }
 0x328   :  { %3172 = vst [vmem:[#allocation30_spill] sm:$0xff] %v2824_v36  ;;  %3173 = vst [vmem:[#allocation13_spill] sm:$0xff] %v2828_v40 }
 0x329   :  { %768 = vst [vmem:[#allocation9 + $0x10] sm:$0xff] %v766_v44  ;;  %903 = vmatmul.mubr.f32.vlgmr.msra.gmra.mxu0 %v766_v44  ;;  %974 = vmatmul.mubr.f32.vlgmr.msra.gmra.mxu1 %v766_v44  ;;  %v2832_v44 = vld [vmem:[#allocation7 + $0x30] sm:$0xff] }
 0x32a   :  { %1143 = vmatprep.mubr.f32.mxu0 %v3153_v57  ;;  %1214 = vmatprep.mubr.f32.mxu1 %v3153_v57  ;;  %3174 = vst [vmem:[#allocation14_spill] sm:$0xff] %v2832_v44  ;;  %v2836_v57 = vld [vmem:[#allocation7 + $0x18] sm:$0xff] }
 0x32b   :  { %1080 = vmatpush1.msra.mxu0 %v2700_v56  ;;  %1151 = vmatpush1.msra.mxu1 %v2702_v52  ;;  %3175 = vst [vmem:[#allocation31_spill] sm:$0xff] %v2836_v57 }
 0x32c   :  { %1081 = vmatprep.subr.mxu0 %v2706_v58  ;;  %1152 = vmatprep.subr.mxu1 %v2708_v50 }
 0x32d   :  { %1082 = vmatpush1.msra.mxu0 %v2712_v60  ;;  %1153 = vmatpush1.msra.mxu1 %v2714_v61 }
 0x32e   :  { %1083 = vmatprep.subr.mxu0 %v2718_v62  ;;  %1154 = vmatprep.subr.mxu1 %v2720_v46 }
 0x32f   :  { %1084 = vmatpush1.msra.mxu0 %v2724_v1  ;;  %1155 = vmatpush1.msra.mxu1 %v2726_v48 }
 0x330   :  { %1085 = vmatprep.subr.mxu0 %v2730_v9  ;;  %1156 = vmatprep.subr.mxu1 %v2732_v24 }
 0x331   :  { %1086 = vmatpush1.msra.mxu0 %v2736_v23  ;;  %1157 = vmatpush1.msra.mxu1 %v2738_v25 }
 0x332   :  { %1087 = vmatprep.subr.mxu0 %v2742_v27  ;;  %1158 = vmatprep.subr.mxu1 %v2744_v29 }
 0x333   :  { %1088 = vmatpush1.msra.mxu0 %v2748_v31  ;;  %1159 = vmatpush1.msra.mxu1 %v2750_v33 }
 0x334   :  { %1089 = vmatprep.subr.mxu0 %v2754_v35  ;;  %1160 = vmatprep.subr.mxu1 %v2756_v37 }
 0x335   :  { %1090 = vmatpush1.msra.mxu0 %v2760_v39  ;;  %1161 = vmatpush1.msra.mxu1 %v2762_v41 }
 0x336   :  { %1091 = vmatprep.subr.mxu0 %v2766_v43  ;;  %1162 = vmatprep.subr.mxu1 %v2768_v45 }
 0x337   :  { %1092 = vmatpush1.msra.mxu0 %v2631_v2  ;;  %1163 = vmatpush1.msra.mxu1 %v2772_v47 }
 0x338   :  { %1093 = vmatprep.subr.mxu0 %v2634_v3  ;;  %1164 = vmatprep.subr.mxu1 %v2776_v49 }
 0x339   :  { %1094 = vmatpush1.msra.mxu0 %v2636_v4  ;;  %1165 = vmatpush1.msra.mxu1 %v2778_v51 }
 0x33a   :  { %1095 = vmatprep.subr.mxu0 %v2638_v5  ;;  %1166 = vmatprep.subr.mxu1 %v2780_v53 }
 0x33b   :  { %1096 = vmatpush1.msra.mxu0 %v2641_v6  ;;  %1167 = vmatpush1.msra.mxu1 %v2784_v59 }
 0x33c   :  { %1097 = vmatprep.subr.mxu0 %v2644_v7  ;;  %1168 = vmatprep.subr.mxu1 %v2788_v22 }
 0x33d   :  { %1098 = vmatpush1.msra.mxu0 %v2647_v8  ;;  %1169 = vmatpush1.msra.mxu1 %v2792_v26 }
 0x33e   :  { %1099 = vmatprep.subr.mxu0 %v2650_v10  ;;  %1170 = vmatprep.subr.mxu1 %v2796_v30 }
 0x33f   :  { %1100 = vmatpush1.msra.mxu0 %v2653_v11  ;;  %1171 = vmatpush1.msra.mxu1 %v2800_v34 }
 0x340   :  { %1101 = vmatprep.subr.mxu0 %v2656_v12  ;;  %1172 = vmatprep.subr.mxu1 %v2804_v38 }
 0x341   :  { %1102 = vmatpush1.msra.mxu0 %v2659_v13  ;;  %1173 = vmatpush1.msra.mxu1 %v2808_v42 }
 0x342   :  { %1103 = vmatprep.subr.mxu0 %v2662_v14  ;;  %1174 = vmatprep.subr.mxu1 %v2812_v54 }
 0x343   :  { %1104 = vmatpush1.msra.mxu0 %v2665_v15  ;;  %1175 = vmatpush1.msra.mxu1 %v2816_v63  ;;  %v2840_v15 = vld [vmem:[#allocation7 + $0x10] sm:$0xff] }
 0x344   :  { %1105 = vmatprep.subr.mxu0 %v2668_v16  ;;  %1176 = vmatprep.subr.mxu1 %v2820_v28  ;;  %3176 = vst [vmem:[#allocation32_spill] sm:$0xff] %v2840_v15 }
 0x345   :  { %1106 = vmatpush1.msra.mxu0 %v2671_v17  ;;  %1177 = vmatpush1.msra.mxu1 %v2824_v36  ;;  %v771_v36 = vld [vmem:[#allocation4 + $0x68] sm:$0xff] }
 0x346   :  { %1107 = vmatprep.subr.mxu0 %v2674_v18  ;;  %1178 = vmatprep.subr.mxu1 %v2828_v40  ;;  %v770_v18 = vld [vmem:[#allocation4 + $0x60] sm:$0xff] }
 0x347   :  { %1108 = vmatpush1.msra.mxu0 %v2677_v19  ;;  %1179 = vmatpush1.msra.mxu1 %v2832_v44 }
 0x348   :  { %1109 = vmatprep.subr.mxu0 %v2680_v20  ;;  %1180 = vmatprep.subr.mxu1 %v2836_v57  ;;  %v772_v20 = vld [vmem:[#allocation4 + $0x70] sm:$0xff] }
 0x349   :  { %1110 = vmatpush1.msra.mxu0 %v2683_v21  ;;  %1181 = vmatpush1.msra.mxu1 %v2840_v15  ;;  %v773_v21 = vld [vmem:[#allocation4 + $0x78] sm:$0xff] }
 0x34a   :  { %1320 = vmatprep.subr.mxu0 %v2694_v55  ;;  %1391 = vmatprep.subr.mxu1 %v2696_v0 }
 0x3e9   :  { %v904_v40 = vpop.f32.mrf.mxu0  ;;  %v975_v57 = vpop.f32.mrf.mxu1 }
 0x3ea   :  { %v980_v17 = vadd.f32 %v904_v40, %v770_v18  ;;  %v982_v63 = vadd.f32 %v975_v57, %v772_v20  ;;  %v3184_v40 = vld [vmem:[#allocation24_spill] sm:$0xff] }
 0x3eb   :  { %v906_v28 = vpop.f32.mrf.mxu0  ;;  %v977_v54 = vpop.f32.mrf.mxu1 }
 0x3ec   :  { %v2003_v19 = vmul.f32 -1.442695, %v980_v17  ;;  %v981_v16 = vadd.f32 %v906_v28, %v771_v36  ;;  %v2005_v15 = vmul.f32 -1.442695, %v982_v63  ;;  %v983_v55 = vadd.f32 %v977_v54, %v773_v21  ;;  %v3182_v54 = vld [vmem:[#allocation29_spill] sm:$0xff]  ;;  %v3183_v63 = vld [vmem:[#allocation23_spill] sm:$0xff] }
 0x3ee   :  { %2074 = vpow2.f32 %v2003_v19  ;;  %v2004_v44 = vmul.f32 -1.442695, %v981_v16 }
 0x3f0   :  { %2076 = vpow2.f32 %v2004_v44  ;;  %v3185_v44 = vld [vmem:[#allocation17_spill] sm:$0xff] }
 0x3f1   :  { %2078 = vpow2.f32 %v2005_v15 }
 0x3fb   :  { %v2075_v14 = vpop.eup %2074 }
 0x3fc   :  { %v993_v42 = vadd.f32 1.0, %v2075_v14 }
 0x3fd   :  { %v2077_v0 = vpop.eup %2076 }
 0x3fe   :  { %2080 = vrcp.f32 %v993_v42  ;;  %v994_v13 = vadd.f32 1.0, %v2077_v0  ;;  %v2079_v17 = vpop.eup %2078  ;;  %v3180_v0 = vld [vmem:[#allocation22_spill] sm:$0xff]  ;;  %v3181_v42 = vld [vmem:[#allocation16_spill] sm:$0xff] }
 0x3ff   :  { %2082 = vtanh.f32 %v983_v55  ;;  %v995_v28 = vadd.f32 1.0, %v2079_v17  ;;  %v3179_v55 = vld [vmem:[#allocation21_spill] sm:$0xff]  ;;  %v3186_v17 = vld [vmem:[#allocation30_spill] sm:$0xff] }
 0x400   :  { %2084 = vrcp.f32 %v994_v13  ;;  %v3177_v13 = vld [vmem:[#allocation15_spill] sm:$0xff] }
 0x401   :  { %2086 = vrcp.f32 %v995_v28  ;;  %v3190_v28 = vld [vmem:[#allocation14_spill] sm:$0xff] }
 0x40b   :  { %v2081_v18 = vpop.eup %2080 }
 0x40c   :  { %v2083_v19 = vpop.eup %2082 }
 0x40d   :  { %v2085_v16 = vpop.eup %2084  ;;  %v1004_v57 = vmul.f32 %v2083_v19, %v2081_v18  ;;  %v3187_v18 = vld [vmem:[#allocation25_spill] sm:$0xff] }
 0x40e   :  { %v1003_v36 = vmul.f32 %v2085_v16, %v2689_v32  ;;  %v2087_v14 = vpop.eup %2086  ;;  %v3178_v32 = vld [vmem:[#allocation28_spill] sm:$0xff]  ;;  %v3188_v19 = vld [vmem:[#allocation13_spill] sm:$0xff]  ;;  %v3189_v16 = vld [vmem:[#allocation18_spill] sm:$0xff] }
 0x410   :  { %v2851_v20 = vadd.f32 %v1004_v57, %v1003_v36  ;;  %v3191_v36 = vld [vmem:[#allocation26_spill] sm:$0xff]  ;;  %v3192_v57 = vld [vmem:[#allocation31_spill] sm:$0xff] }
 0x412   :  { %2088 = vtanh.f32 %v2851_v20 }
 0x41f   :  { %v2089_v21 = vpop.eup %2088 }
 0x420   :  { %v1007_v15 = vmul.f32 %v2089_v21, %v2087_v14  ;;  %v3193_v14 = vld [vmem:[#allocation19_spill] sm:$0xff]  ;;  %v3194_v21 = vmov 0.0  }
 0x422   :  { %1009 = vst [vmem:[#allocation9 + $0x18] sm:$0xff] %v1007_v15  ;;  %1144 = vmatmul.mubr.f32.vlgmr.msra.gmra.mxu0 %v1007_v15  ;;  %1215 = vmatmul.mubr.f32.vlgmr.msra.gmra.mxu1 %v1007_v15  ;;  %v3195_v15 = vld [vmem:[#allocation32_spill] sm:$0xff] }
 0x423   :  { %1321 = vmatpush1.msra.mxu0 %v2700_v56  ;;  %1392 = vmatpush1.msra.mxu1 %v2702_v52 }
 0x424   :  { %1322 = vmatprep.subr.mxu0 %v2706_v58  ;;  %1393 = vmatprep.subr.mxu1 %v2708_v50 }
 0x425   :  { %1323 = vmatpush1.msra.mxu0 %v2712_v60  ;;  %1394 = vmatpush1.msra.mxu1 %v2714_v61 }
 0x426   :  { %1324 = vmatprep.subr.mxu0 %v2718_v62  ;;  %1395 = vmatprep.subr.mxu1 %v2720_v46 }
 0x427   :  { %1325 = vmatpush1.msra.mxu0 %v2724_v1  ;;  %1396 = vmatpush1.msra.mxu1 %v2726_v48 }
 0x428   :  { %1326 = vmatprep.subr.mxu0 %v2730_v9  ;;  %1397 = vmatprep.subr.mxu1 %v2732_v24 }
 0x429   :  { %1327 = vmatpush1.msra.mxu0 %v2736_v23  ;;  %1398 = vmatpush1.msra.mxu1 %v2738_v25 }
 0x42a   :  { %1328 = vmatprep.subr.mxu0 %v2742_v27  ;;  %1399 = vmatprep.subr.mxu1 %v2744_v29 }
 0x42b   :  { %1329 = vmatpush1.msra.mxu0 %v2748_v31  ;;  %1400 = vmatpush1.msra.mxu1 %v2750_v33 }
 0x42c   :  { %1330 = vmatprep.subr.mxu0 %v2754_v35  ;;  %1401 = vmatprep.subr.mxu1 %v2756_v37 }
 0x42d   :  { %1331 = vmatpush1.msra.mxu0 %v2760_v39  ;;  %1402 = vmatpush1.msra.mxu1 %v2762_v41 }
 0x42e   :  { %1332 = vmatprep.subr.mxu0 %v2766_v43  ;;  %1403 = vmatprep.subr.mxu1 %v2768_v45 }
 0x42f   :  { %1333 = vmatpush1.msra.mxu0 %v2631_v2  ;;  %1404 = vmatpush1.msra.mxu1 %v2772_v47 }
 0x430   :  { %1334 = vmatprep.subr.mxu0 %v2634_v3  ;;  %1405 = vmatprep.subr.mxu1 %v2776_v49 }
 0x431   :  { %1335 = vmatpush1.msra.mxu0 %v2636_v4  ;;  %1406 = vmatpush1.msra.mxu1 %v2778_v51 }
 0x432   :  { %1336 = vmatprep.subr.mxu0 %v2638_v5  ;;  %1407 = vmatprep.subr.mxu1 %v2780_v53 }
 0x433   :  { %1337 = vmatpush1.msra.mxu0 %v2641_v6  ;;  %1408 = vmatpush1.msra.mxu1 %v2784_v59 }
 0x434   :  { %1338 = vmatprep.subr.mxu0 %v2644_v7  ;;  %1409 = vmatprep.subr.mxu1 %v2788_v22 }
 0x435   :  { %1339 = vmatpush1.msra.mxu0 %v2647_v8  ;;  %1410 = vmatpush1.msra.mxu1 %v2792_v26 }
 0x436   :  { %1340 = vmatprep.subr.mxu0 %v2650_v10  ;;  %1411 = vmatprep.subr.mxu1 %v2796_v30 }
 0x437   :  { %1341 = vmatpush1.msra.mxu0 %v2653_v11  ;;  %1412 = vmatpush1.msra.mxu1 %v2800_v34 }
 0x438   :  { %1342 = vmatprep.subr.mxu0 %v2656_v12  ;;  %1413 = vmatprep.subr.mxu1 %v2804_v38 }
 0x439   :  { %1343 = vmatpush1.msra.mxu0 %v3177_v13  ;;  %1414 = vmatpush1.msra.mxu1 %v3178_v32 }
 0x43a   :  { %1344 = vmatprep.subr.mxu0 %v3179_v55  ;;  %1415 = vmatprep.subr.mxu1 %v3180_v0 }
 0x43b   :  { %1345 = vmatpush1.msra.mxu0 %v3181_v42  ;;  %1416 = vmatpush1.msra.mxu1 %v3182_v54 }
 0x43c   :  { %1346 = vmatprep.subr.mxu0 %v3183_v63  ;;  %1417 = vmatprep.subr.mxu1 %v3184_v40 }
 0x43d   :  { %1347 = vmatpush1.msra.mxu0 %v3185_v44  ;;  %1418 = vmatpush1.msra.mxu1 %v3186_v17  ;;  %v3196_v17 = vld [vmem:[#allocation27_spill] sm:$0xff]  ;;  %v1012_v44 = vld [vmem:[#allocation4 + $0x88] sm:$0xff] }
 0x43e   :  { %1348 = vmatprep.subr.mxu0 %v3187_v18  ;;  %1419 = vmatprep.subr.mxu1 %v3188_v19  ;;  %v3197_v18 = vld [vmem:[#allocation20_spill] sm:$0xff]  ;;  %v1011_v19 = vld [vmem:[#allocation4 + $0x80] sm:$0xff] }
 0x43f   :  { %1349 = vmatpush1.msra.mxu0 %v3189_v16  ;;  %1420 = vmatpush1.msra.mxu1 %v3190_v28 }
 0x440   :  { %1350 = vmatprep.subr.mxu0 %v3191_v36  ;;  %1421 = vmatprep.subr.mxu1 %v3192_v57 }
 0x441   :  { %1351 = vmatpush1.msra.mxu0 %v3193_v14  ;;  %1384 = vmatprep.mubr.f32.mxu0 %v3194_v21  ;;  %v1013_v14 = vld [vmem:[#allocation4 + $0x90] sm:$0xff] }
 0x442   :  { %1422 = vmatpush1.msra.mxu1 %v3195_v15  ;;  %1455 = vmatprep.mubr.f32.mxu1 %v3194_v21  ;;  %v1014_v15 = vld [vmem:[#allocation4 + $0x98] sm:$0xff] }
 0x443   :  { %1561 = vmatprep.subr.mxu0 %v3196_v17  ;;  %1632 = vmatprep.subr.mxu1 %v3197_v18 }
 0x4e2   :  { %v1145_v16 = vpop.f32.mrf.mxu0  ;;  %v1216_v54 = vpop.f32.mrf.mxu1 }
 0x4e3   :  { %v1221_v28 = vadd.f32 %v1145_v16, %v1011_v19  ;;  %v1223_v42 = vadd.f32 %v1216_v54, %v1013_v14  ;;  %v3214_v14 = vld [vmem:[#allocation19_spill] sm:$0xff] }
 0x4e4   :  { %v1147_v40 = vpop.f32.mrf.mxu0  ;;  %v1218_v0 = vpop.f32.mrf.mxu1 }
 0x4e5   :  { %v2006_v36 = vmul.f32 -1.442695, %v1221_v28  ;;  %v1222_v63 = vadd.f32 %v1147_v40, %v1012_v44  ;;  %v2008_v21 = vmul.f32 -1.442695, %v1223_v42  ;;  %v1224_v17 = vadd.f32 %v1218_v0, %v1014_v15  ;;  %v3216_v15 = vld [vmem:[#allocation32_spill] sm:$0xff] }
 0x4e7   :  { %2090 = vpow2.f32 %v2006_v36  ;;  %v2007_v57 = vmul.f32 -1.442695, %v1222_v63 }
 0x4e9   :  { %2092 = vpow2.f32 %v2007_v57  ;;  %v3213_v57 = vld [vmem:[#allocation31_spill] sm:$0xff] }
 0x4ea   :  { %2094 = vpow2.f32 %v2008_v21  ;;  %v3215_v21 = vmov 0.0  }
 0x4f4   :  { %v2091_v55 = vpop.eup %2090 }
 0x4f5   :  { %v1234_v32 = vadd.f32 1.0, %v2091_v55 }
 0x4f6   :  { %v2093_v18 = vpop.eup %2092 }
 0x4f7   :  { %2096 = vrcp.f32 %v1234_v32  ;;  %v1235_v13 = vadd.f32 1.0, %v2093_v18  ;;  %v2095_v19 = vpop.eup %2094  ;;  %v3210_v32 = vld [vmem:[#allocation18_spill] sm:$0xff] }
 0x4f8   :  { %2098 = vtanh.f32 %v1224_v17  ;;  %v1236_v16 = vadd.f32 1.0, %v2095_v19  ;;  %v3211_v17 = vld [vmem:[#allocation14_spill] sm:$0xff]  ;;  %v3217_v19 = vld [vmem:[#allocation27_spill] sm:$0xff] }
 0x4f9   :  { %2100 = vrcp.f32 %v1235_v13  ;;  %v3209_v13 = vld [vmem:[#allocation13_spill] sm:$0xff]  ;;  %v3212_v18 = vld [vmem:[#allocation26_spill] sm:$0xff] }
 0x4fa   :  { %2102 = vrcp.f32 %v1236_v16  ;;  %v1253_v16 = vld [vmem:[#allocation4 + $0xa8] sm:$0xff] }
 0x504   :  { %v2097_v40 = vpop.eup %2096 }
 0x505   :  { %v2099_v44 = vpop.eup %2098 }
 0x506   :  { %v2101_v63 = vpop.eup %2100  ;;  %v1245_v54 = vmul.f32 %v2099_v44, %v2097_v40  ;;  %v3218_v40 = vld [vmem:[#allocation20_spill] sm:$0xff]  ;;  %v1252_v44 = vld [vmem:[#allocation4 + $0xa0] sm:$0xff] }
 0x507   :  { %v1244_v28 = vmul.f32 %v2101_v63, %v2851_v20  ;;  %v2103_v55 = vpop.eup %2102  ;;  %v3208_v20 = vld [vmem:[#allocation25_spill] sm:$0xff] }
 0x509   :  { %v2921_v36 = vadd.f32 %v1245_v54, %v1244_v28 }
 0x50b   :  { %2104 = vtanh.f32 %v2921_v36 }
 0x518   :  { %v2105_v0 = vpop.eup %2104 }
 0x519   :  { %v1248_v42 = vmul.f32 %v2105_v0, %v2103_v55 }
 0x51b   :  { %1250 = vst [vmem:[#allocation9 + $0x20] sm:$0xff] %v1248_v42  ;;  %1385 = vmatmul.mubr.f32.vlgmr.msra.gmra.mxu0 %v1248_v42  ;;  %1456 = vmatmul.mubr.f32.vlgmr.msra.gmra.mxu1 %v1248_v42 }
 0x51c   :  { %1562 = vmatpush1.msra.mxu0 %v2700_v56  ;;  %1633 = vmatpush1.msra.mxu1 %v2702_v52 }
 0x51d   :  { %1563 = vmatprep.subr.mxu0 %v2706_v58  ;;  %1634 = vmatprep.subr.mxu1 %v2708_v50 }
 0x51e   :  { %1564 = vmatpush1.msra.mxu0 %v2712_v60  ;;  %1635 = vmatpush1.msra.mxu1 %v2714_v61 }
 0x51f   :  { %1565 = vmatprep.subr.mxu0 %v2718_v62  ;;  %1636 = vmatprep.subr.mxu1 %v2720_v46 }
 0x520   :  { %1566 = vmatpush1.msra.mxu0 %v2724_v1  ;;  %1637 = vmatpush1.msra.mxu1 %v2726_v48 }
 0x521   :  { %1567 = vmatprep.subr.mxu0 %v2730_v9  ;;  %1638 = vmatprep.subr.mxu1 %v2732_v24 }
 0x522   :  { %1568 = vmatpush1.msra.mxu0 %v2736_v23  ;;  %1639 = vmatpush1.msra.mxu1 %v2738_v25 }
 0x523   :  { %1569 = vmatprep.subr.mxu0 %v2742_v27  ;;  %1640 = vmatprep.subr.mxu1 %v2744_v29 }
 0x524   :  { %1570 = vmatpush1.msra.mxu0 %v2748_v31  ;;  %1641 = vmatpush1.msra.mxu1 %v2750_v33 }
 0x525   :  { %1571 = vmatprep.subr.mxu0 %v2754_v35  ;;  %1642 = vmatprep.subr.mxu1 %v2756_v37 }
 0x526   :  { %1572 = vmatpush1.msra.mxu0 %v2760_v39  ;;  %1643 = vmatpush1.msra.mxu1 %v2762_v41 }
 0x527   :  { %1573 = vmatprep.subr.mxu0 %v2766_v43  ;;  %1644 = vmatprep.subr.mxu1 %v2768_v45 }
 0x528   :  { %1574 = vmatpush1.msra.mxu0 %v2631_v2  ;;  %1645 = vmatpush1.msra.mxu1 %v2772_v47  ;;  %v3198_v2 = vld [vmem:[#allocation15_spill] sm:$0xff] }
 0x529   :  { %1575 = vmatprep.subr.mxu0 %v2634_v3  ;;  %1646 = vmatprep.subr.mxu1 %v2776_v49  ;;  %v3199_v3 = vld [vmem:[#allocation28_spill] sm:$0xff] }
 0x52a   :  { %1576 = vmatpush1.msra.mxu0 %v2636_v4  ;;  %1647 = vmatpush1.msra.mxu1 %v2778_v51  ;;  %v3200_v4 = vld [vmem:[#allocation21_spill] sm:$0xff] }
 0x52b   :  { %1577 = vmatprep.subr.mxu0 %v2638_v5  ;;  %1648 = vmatprep.subr.mxu1 %v2780_v53  ;;  %v3201_v5 = vld [vmem:[#allocation22_spill] sm:$0xff] }
 0x52c   :  { %1578 = vmatpush1.msra.mxu0 %v2641_v6  ;;  %1649 = vmatpush1.msra.mxu1 %v2784_v59  ;;  %v3202_v6 = vld [vmem:[#allocation16_spill] sm:$0xff] }
 0x52d   :  { %1579 = vmatprep.subr.mxu0 %v2644_v7  ;;  %1650 = vmatprep.subr.mxu1 %v2788_v22  ;;  %v3203_v7 = vld [vmem:[#allocation29_spill] sm:$0xff] }
 0x52e   :  { %1580 = vmatpush1.msra.mxu0 %v2647_v8  ;;  %1651 = vmatpush1.msra.mxu1 %v2792_v26  ;;  %v3204_v8 = vld [vmem:[#allocation23_spill] sm:$0xff] }
 0x52f   :  { %1581 = vmatprep.subr.mxu0 %v2650_v10  ;;  %1652 = vmatprep.subr.mxu1 %v2796_v30  ;;  %v3205_v10 = vld [vmem:[#allocation24_spill] sm:$0xff] }
 0x530   :  { %1582 = vmatpush1.msra.mxu0 %v2653_v11  ;;  %1653 = vmatpush1.msra.mxu1 %v2800_v34  ;;  %v3206_v11 = vld [vmem:[#allocation17_spill] sm:$0xff] }
 0x531   :  { %1583 = vmatprep.subr.mxu0 %v2656_v12  ;;  %1654 = vmatprep.subr.mxu1 %v2804_v38  ;;  %v3207_v12 = vld [vmem:[#allocation30_spill] sm:$0xff] }
 0x532   :  { %1584 = vmatpush1.msra.mxu0 %v3198_v2  ;;  %1655 = vmatpush1.msra.mxu1 %v3199_v3  ;;  %v1254_v2 = vld [vmem:[#allocation4 + $0xb0] sm:$0xff] }
 0x533   :  { %1585 = vmatprep.subr.mxu0 %v3200_v4  ;;  %1656 = vmatprep.subr.mxu1 %v3201_v5 }
 0x534   :  { %1586 = vmatpush1.msra.mxu0 %v3202_v6  ;;  %1657 = vmatpush1.msra.mxu1 %v3203_v7 }
 0x535   :  { %1587 = vmatprep.subr.mxu0 %v3204_v8  ;;  %1658 = vmatprep.subr.mxu1 %v3205_v10  ;;  %v1255_v8 = vld [vmem:[#allocation4 + $0xb8] sm:$0xff] }
 0x536   :  { %1588 = vmatpush1.msra.mxu0 %v3206_v11  ;;  %1659 = vmatpush1.msra.mxu1 %v3207_v12 }
 0x537   :  { %1589 = vmatprep.subr.mxu0 %v3208_v20  ;;  %1660 = vmatprep.subr.mxu1 %v3209_v13 }
 0x538   :  { %1590 = vmatpush1.msra.mxu0 %v3210_v32  ;;  %1661 = vmatpush1.msra.mxu1 %v3211_v17 }
 0x539   :  { %1591 = vmatprep.subr.mxu0 %v3212_v18  ;;  %1662 = vmatprep.subr.mxu1 %v3213_v57 }
 0x53a   :  { %1592 = vmatpush1.msra.mxu0 %v3214_v14  ;;  %1625 = vmatprep.mubr.f32.mxu0 %v3215_v21 }
 0x53b   :  { %1663 = vmatpush1.msra.mxu1 %v3216_v15  ;;  %1696 = vmatprep.mubr.f32.mxu1 %v3215_v21 }
 0x53c   :  { %1802 = vmatprep.subr.mxu0 %v3217_v19  ;;  %1873 = vmatprep.subr.mxu1 %v3218_v40 }
 0x5db   :  { %v1386_v63 = vpop.f32.mrf.mxu0  ;;  %v1457_v4 = vpop.f32.mrf.mxu1 }
 0x5dc   :  { %v1462_v28 = vadd.f32 %v1386_v63, %v1252_v44  ;;  %v1464_v6 = vadd.f32 %v1457_v4, %v1254_v2 }
 0x5dd   :  { %v1388_v54 = vpop.f32.mrf.mxu0  ;;  %v1459_v11 = vpop.f32.mrf.mxu1 }
 0x5de   :  { %v2009_v55 = vmul.f32 -1.442695, %v1462_v28  ;;  %v1463_v0 = vadd.f32 %v1388_v54, %v1253_v16  ;;  %v2011_v20 = vmul.f32 -1.442695, %v1464_v6  ;;  %v1465_v18 = vadd.f32 %v1459_v11, %v1255_v8 }
 0x5e0   :  { %2106 = vpow2.f32 %v2009_v55  ;;  %v2010_v42 = vmul.f32 -1.442695, %v1463_v0 }
 0x5e2   :  { %2108 = vpow2.f32 %v2010_v42 }
 0x5e3   :  { %2110 = vpow2.f32 %v2011_v20 }
 0x5ed   :  { %v2107_v32 = vpop.eup %2106 }
 0x5ee   :  { %v1475_v14 = vadd.f32 1.0, %v2107_v32 }
 0x5ef   :  { %v2109_v19 = vpop.eup %2108 }
 0x5f0   :  { %2112 = vrcp.f32 %v1475_v14  ;;  %v1476_v40 = vadd.f32 1.0, %v2109_v19  ;;  %v2111_v44 = vpop.eup %2110  ;;  %v1735_v19 = vld [vmem:[#allocation4 + $0xe8] sm:$0xff] }
 0x5f1   :  { %2114 = vtanh.f32 %v1465_v18  ;;  %v1477_v54 = vadd.f32 1.0, %v2111_v44  ;;  %v1734_v18 = vld [vmem:[#allocation4 + $0xe0] sm:$0xff] }
 0x5f2   :  { %2116 = vrcp.f32 %v1476_v40 }
 0x5f3   :  { %2118 = vrcp.f32 %v1477_v54  ;;  %v1736_v54 = vld [vmem:[#allocation4 + $0xf0] sm:$0xff] }
 0x5fd   :  { %v2113_v63 = vpop.eup %2112 }
 0x5fe   :  { %v2115_v16 = vpop.eup %2114 }
 0x5ff   :  { %v2117_v28 = vpop.eup %2116  ;;  %v1486_v0 = vmul.f32 %v2115_v16, %v2113_v63 }
 0x600   :  { %v1485_v55 = vmul.f32 %v2117_v28, %v2921_v36  ;;  %v2119_v2 = vpop.eup %2118 }
 0x602   :  { %v2991_v42 = vadd.f32 %v1486_v0, %v1485_v55 }
 0x604   :  { %2120 = vtanh.f32 %v2991_v42 }
 0x611   :  { %v2121_v4 = vpop.eup %2120 }
 0x612   :  { %v1489_v6 = vmul.f32 %v2121_v4, %v2119_v2 }
 0x614   :  { %1491 = vst [vmem:[#allocation9 + $0x28] sm:$0xff] %v1489_v6  ;;  %1626 = vmatmul.mubr.f32.vlgmr.msra.gmra.mxu0 %v1489_v6  ;;  %1697 = vmatmul.mubr.f32.vlgmr.msra.gmra.mxu1 %v1489_v6 }
 0x615   :  { %1803 = vmatpush1.msra.mxu0 %v2700_v56  ;;  %1874 = vmatpush1.msra.mxu1 %v2702_v52  ;;  %v1774_v56 = vld [vmem:[#allocation7 + $0x120] sm:$0xff]  ;;  %v1771_v52 = vld [vmem:[#allocation7 + $0x108] sm:$0xff] }
 0x616   :  { %1804 = vmatprep.subr.mxu0 %v2706_v58  ;;  %1875 = vmatprep.subr.mxu1 %v2708_v50  ;;  %v1770_v58 = vld [vmem:[#allocation7 + $0x100] sm:$0xff]  ;;  %v1767_v50 = vld [vmem:[#allocation7 + $0xe8] sm:$0xff] }
 0x617   :  { %1805 = vmatpush1.msra.mxu0 %v2712_v60  ;;  %1876 = vmatpush1.msra.mxu1 %v2714_v61  ;;  %v1766_v60 = vld [vmem:[#allocation7 + $0xe0] sm:$0xff]  ;;  %v1763_v61 = vld [vmem:[#allocation7 + $0xc8] sm:$0xff] }
 0x618   :  { %1806 = vmatprep.subr.mxu0 %v2718_v62  ;;  %1877 = vmatprep.subr.mxu1 %v2720_v46  ;;  %v1762_v62 = vld [vmem:[#allocation7 + $0xc0] sm:$0xff]  ;;  %v1759_v46 = vld [vmem:[#allocation7 + $0xa8] sm:$0xff] }
 0x619   :  { %1807 = vmatpush1.msra.mxu0 %v2724_v1  ;;  %1878 = vmatpush1.msra.mxu1 %v2726_v48  ;;  %v1758_v1 = vld [vmem:[#allocation7 + $0xa0] sm:$0xff]  ;;  %v1755_v48 = vld [vmem:[#allocation7 + $0x88] sm:$0xff] }
 0x61a   :  { %1808 = vmatprep.subr.mxu0 %v2730_v9  ;;  %1879 = vmatprep.subr.mxu1 %v2732_v24  ;;  %v1754_v9 = vld [vmem:[#allocation7 + $0x80] sm:$0xff]  ;;  %v1751_v24 = vld [vmem:[#allocation7 + $0x68] sm:$0xff] }
 0x61b   :  { %1809 = vmatpush1.msra.mxu0 %v2736_v23  ;;  %1880 = vmatpush1.msra.mxu1 %v2738_v25  ;;  %v1750_v23 = vld [vmem:[#allocation7 + $0x60] sm:$0xff]  ;;  %v1747_v25 = vld [vmem:[#allocation7 + $0x48] sm:$0xff] }
 0x61c   :  { %1810 = vmatprep.subr.mxu0 %v2742_v27  ;;  %1881 = vmatprep.subr.mxu1 %v2744_v29  ;;  %v1746_v27 = vld [vmem:[#allocation7 + $0x40] sm:$0xff]  ;;  %v1743_v29 = vld [vmem:[#allocation7 + $0x28] sm:$0xff] }
 0x61d   :  { %1811 = vmatpush1.msra.mxu0 %v2748_v31  ;;  %1882 = vmatpush1.msra.mxu1 %v2750_v33  ;;  %v1742_v31 = vld [vmem:[#allocation7 + $0x20] sm:$0xff]  ;;  %v1739_v33 = vld [vmem:[#allocation7 + $0x8] sm:$0xff] }
 0x61e   :  { %1812 = vmatprep.subr.mxu0 %v2754_v35  ;;  %1883 = vmatprep.subr.mxu1 %v2756_v37  ;;  %v1738_v35 = vld [vmem:[#allocation7] sm:$0xff] }
 0x61f   :  { %1813 = vmatpush1.msra.mxu0 %v2760_v39  ;;  %1884 = vmatpush1.msra.mxu1 %v2762_v41  ;;  %v1493_v37 = vld [vmem:[#allocation4 + $0xc0] sm:$0xff]  ;;  %v1494_v41 = vld [vmem:[#allocation4 + $0xc8] sm:$0xff] }
 0x620   :  { %1814 = vmatprep.subr.mxu0 %v2766_v43  ;;  %1885 = vmatprep.subr.mxu1 %v2768_v45 }
 0x621   :  { %1886 = vmatpush1.msra.mxu1 %v2772_v47  ;;  %1866 = vmatprep.mubr.f32.mxu0 %v3215_v21 }
 0x622   :  { %1887 = vmatprep.subr.mxu1 %v2776_v49  ;;  %1937 = vmatprep.mubr.f32.mxu1 %v3215_v21 }
 0x623   :  { %1888 = vmatpush1.msra.mxu1 %v2778_v51  ;;  %1815 = vmatpush1.msra.mxu0 %v1774_v56 }
 0x624   :  { %1889 = vmatprep.subr.mxu1 %v2780_v53  ;;  %1816 = vmatprep.subr.mxu0 %v1771_v52  ;;  %v1495_v53 = vld [vmem:[#allocation4 + $0xd0] sm:$0xff] }
 0x625   :  { %1890 = vmatpush1.msra.mxu1 %v2784_v59  ;;  %1817 = vmatpush1.msra.mxu0 %v1770_v58 }
 0x626   :  { %1891 = vmatprep.subr.mxu1 %v2788_v22  ;;  %1818 = vmatprep.subr.mxu0 %v1767_v50 }
 0x627   :  { %1892 = vmatpush1.msra.mxu1 %v2792_v26  ;;  %1819 = vmatpush1.msra.mxu0 %v1766_v60  ;;  %v1496_v26 = vld [vmem:[#allocation4 + $0xd8] sm:$0xff] }
 0x628   :  { %1893 = vmatprep.subr.mxu1 %v2796_v30  ;;  %1820 = vmatprep.subr.mxu0 %v1763_v61 }
 0x629   :  { %1894 = vmatpush1.msra.mxu1 %v2800_v34  ;;  %1821 = vmatpush1.msra.mxu0 %v1762_v62 }
 0x62a   :  { %1895 = vmatprep.subr.mxu1 %v2804_v38  ;;  %1822 = vmatprep.subr.mxu0 %v1759_v46 }
 0x62b   :  { %1896 = vmatpush1.msra.mxu1 %v3199_v3  ;;  %1823 = vmatpush1.msra.mxu0 %v1758_v1 }
 0x62c   :  { %1897 = vmatprep.subr.mxu1 %v3201_v5  ;;  %1824 = vmatprep.subr.mxu0 %v1755_v48 }
 0x62d   :  { %1898 = vmatpush1.msra.mxu1 %v3203_v7  ;;  %1825 = vmatpush1.msra.mxu0 %v1754_v9 }
 0x62e   :  { %1899 = vmatprep.subr.mxu1 %v3205_v10  ;;  %1826 = vmatprep.subr.mxu0 %v1751_v24 }
 0x62f   :  { %1900 = vmatpush1.msra.mxu1 %v3207_v12  ;;  %1827 = vmatpush1.msra.mxu0 %v1750_v23 }
 0x630   :  { %1901 = vmatprep.subr.mxu1 %v3209_v13  ;;  %1828 = vmatprep.subr.mxu0 %v1747_v25 }
 0x631   :  { %1902 = vmatpush1.msra.mxu1 %v3211_v17  ;;  %1829 = vmatpush1.msra.mxu0 %v1746_v27 }
 0x632   :  { %1903 = vmatprep.subr.mxu1 %v3213_v57  ;;  %1830 = vmatprep.subr.mxu0 %v1743_v29 }
 0x633   :  { %1904 = vmatpush1.msra.mxu1 %v3216_v15  ;;  %1831 = vmatpush1.msra.mxu0 %v1742_v31 }
 0x634   :  { %1832 = vmatprep.subr.mxu0 %v1739_v33 }
 0x635   :  { %1833 = vmatpush1.msra.mxu0 %v1738_v35 }
 0x6d4   :  { %v1627_v39 = vpop.f32.mrf.mxu0  ;;  %v1698_v59 = vpop.f32.mrf.mxu1 }
 0x6d5   :  { %v1703_v43 = vadd.f32 %v1627_v39, %v1493_v37  ;;  %v1705_v22 = vadd.f32 %v1698_v59, %v1495_v53 }
 0x6d6   :  { %v1629_v45 = vpop.f32.mrf.mxu0  ;;  %v1700_v30 = vpop.f32.mrf.mxu1 }
 0x6d7   :  { %v2012_v47 = vmul.f32 -1.442695, %v1703_v43  ;;  %v1704_v49 = vadd.f32 %v1629_v45, %v1494_v41  ;;  %v2014_v34 = vmul.f32 -1.442695, %v1705_v22  ;;  %v1706_v36 = vadd.f32 %v1700_v30, %v1496_v26 }
 0x6d9   :  { %2122 = vpow2.f32 %v2012_v47  ;;  %v2013_v51 = vmul.f32 -1.442695, %v1704_v49 }
 0x6db   :  { %2124 = vpow2.f32 %v2013_v51 }
 0x6dc   :  { %2126 = vpow2.f32 %v2014_v34 }
 0x6e6   :  { %v2123_v38 = vpop.eup %2122 }
 0x6e7   :  { %v1716_v3 = vadd.f32 1.0, %v2123_v38 }
 0x6e8   :  { %v2125_v5 = vpop.eup %2124 }
 0x6e9   :  { %2128 = vrcp.f32 %v1716_v3  ;;  %v1717_v7 = vadd.f32 1.0, %v2125_v5  ;;  %v2127_v10 = vpop.eup %2126 }
 0x6ea   :  { %2130 = vtanh.f32 %v1706_v36  ;;  %v1718_v57 = vadd.f32 1.0, %v2127_v10 }
 0x6eb   :  { %2132 = vrcp.f32 %v1717_v7 }
 0x6ec   :  { %2134 = vrcp.f32 %v1718_v57 }
 0x6f6   :  { %v2129_v12 = vpop.eup %2128 }
 0x6f7   :  { %v2131_v13 = vpop.eup %2130 }
 0x6f8   :  { %v2133_v17 = vpop.eup %2132  ;;  %v1727_v15 = vmul.f32 %v2131_v13, %v2129_v12 }
 0x6f9   :  { %v1726_v21 = vmul.f32 %v2133_v17, %v2991_v42  ;;  %v2135_v11 = vpop.eup %2134  ;;  %v1737_v42 = vld [vmem:[#allocation4 + $0xf8] sm:$0xff] }
 0x6fb   :  { %v1728_v8 = vadd.f32 %v1727_v15, %v1726_v21 }
 0x6fd   :  { %2136 = vtanh.f32 %v1728_v8 }
 0x70a   :  { %v2137_v20 = vpop.eup %2136 }
 0x70b   :  { %v1730_v32 = vmul.f32 %v2137_v20, %v2135_v11 }
 0x70d   :  { %1732 = vst [vmem:[#allocation9 + $0x30] sm:$0xff] %v1730_v32  ;;  %1867 = vmatmul.mubr.f32.vlgmr.msra.gmra.mxu0 %v1730_v32  ;;  %1938 = vmatmul.mubr.f32.vlgmr.msra.gmra.mxu1 %v1730_v32 }
 0x7cd   :  { %v1868_v14 = vpop.f32.mrf.mxu0  ;;  %v1939_v55 = vpop.f32.mrf.mxu1 }
 0x7ce   :  { %v1944_v40 = vadd.f32 %v1868_v14, %v1734_v18  ;;  %v1946_v0 = vadd.f32 %v1939_v55, %v1736_v54 }
 0x7cf   :  { %v1870_v44 = vpop.f32.mrf.mxu0  ;;  %v1941_v2 = vpop.f32.mrf.mxu1 }
 0x7d0   :  { %v2015_v63 = vmul.f32 -1.442695, %v1944_v40  ;;  %v1945_v16 = vadd.f32 %v1870_v44, %v1735_v19  ;;  %v2017_v4 = vmul.f32 -1.442695, %v1946_v0  ;;  %v1947_v56 = vadd.f32 %v1941_v2, %v1737_v42 }
 0x7d2   :  { %2138 = vpow2.f32 %v2015_v63  ;;  %v2016_v28 = vmul.f32 -1.442695, %v1945_v16 }
 0x7d4   :  { %2140 = vpow2.f32 %v2016_v28 }
 0x7d5   :  { %2142 = vpow2.f32 %v2017_v4 }
 0x7df   :  { %v2139_v6 = vpop.eup %2138 }
 0x7e0   :  { %v1957_v52 = vadd.f32 1.0, %v2139_v6 }
 0x7e1   :  { %v2141_v58 = vpop.eup %2140 }
 0x7e2   :  { %2144 = vrcp.f32 %v1957_v52  ;;  %v1958_v50 = vadd.f32 1.0, %v2141_v58  ;;  %v2143_v60 = vpop.eup %2142 }
 0x7e3   :  { %2146 = vtanh.f32 %v1947_v56  ;;  %v1959_v1 = vadd.f32 1.0, %v2143_v60 }
 0x7e4   :  { %2148 = vrcp.f32 %v1958_v50 }
 0x7e5   :  { %2150 = vrcp.f32 %v1959_v1 }
 0x7ef   :  { %v2145_v61 = vpop.eup %2144 }
 0x7f0   :  { %v2147_v62 = vpop.eup %2146 }
 0x7f1   :  { %v2149_v46 = vpop.eup %2148  ;;  %v1968_v9 = vmul.f32 %v2147_v62, %v2145_v61 }
 0x7f2   :  { %v1967_v48 = vmul.f32 %v2149_v46, %v1728_v8  ;;  %v2151_v23 = vpop.eup %2150 }
 0x7f4   :  { %v1969_v24 = vadd.f32 %v1968_v9, %v1967_v48 }
 0x7f6   :  { %2152 = vtanh.f32 %v1969_v24 }
 0x803   :  { %v2153_v25 = vpop.eup %2152 }
 0x804   :  { %v1971_v27 = vmul.f32 %v2153_v25, %v2151_v23 }
 0x806   :  { %1973 = vst [vmem:[#allocation9 + $0x38] sm:$0xff] %v1971_v27 }
 0x807   :  { %2205 = shalt.err (!%p2202_p0)
}
 0x808   :  { %s2226_s22 = smov 128   ;;  %s2227_s23 = smov 8  }
 0x809   :  { %1987 = dma.vmem_to_hbm [thread:$0]  %s1982_s1, 1024, %s3045_s2, [#allocation6], %s2226_s22, %s2226_s22, %s2227_s23  }
 0x80a   :  { %2218 = dma.done.wait [#allocation6], 1024  }
 0x80b   :  { %2219 = vsyncadd [#allocation6], 4294966272 }
 0x80c   :  { %1991 = vsyncpa [#allocation5], 1 }
 0x80d   :  { %1992 = vsyncpa [#allocation8], 1 }
 0x80e   :  { %1993 = vsyncpa [#allocation6], 1 }

</bundles_post_ra>
